<compile_context>
chip_gen: v6e
topology: v6e:2x2x1
jax: 0.10.0
libtpu: 0.0.40
codegen_flags: <defaults>
</compile_context>

<pallas_src>
import functools

import jax
import jax.numpy as jnp
from jax import lax
from jax.experimental import pallas as pl
from jax.experimental.pallas import tpu as pltpu


# ----------------------------- fused Pallas kernel --------------------------

def _fused_block_kernel(cols0_ref, w_d1_ref, b_d1_ref, w_side_ref, b_side_ref,
                        w_d2_ref, b_d2_ref, w_o1_ref, b_o1_ref,
                        w_o2_ref, b_o2_ref, masks_ref, wqk_ref, wvg_ref,
                        o_ref, *, cin, wo, hw):
    """Whole ResNetAttentionBlock_small forward for ONE image (grid step = image).

    cols0 : [1, 9*Cin, HW] f32  im2col^T of the input for the stride-2 convs
    w_d1  : [Cout, 9*Cin]       down1 3x3 s2 weights (BN scale folded)
    w_side: [Cout, Cin]         side 1x1 s2 weights (BN scale folded)
    w_d2/w_o1/w_o2 : [9, Cout, Cout] per-tap weights of the stride-1 3x3 convs
    masks : [9, HW] f32         tap validity masks (zero-padding boundaries)
    wqk   : [C, C]  = (Wq @ Wk^T)^T ;  wvg : [C, C] = (gamma * Wv)^T
    out   : [1, Cout, HW] f32
    """
    f32 = jnp.float32
    cols0 = cols0_ref[0]                                            # [9*Cin, HW]

    # --- downsample conv1: 3x3 stride-2 pad-1 + BN + ReLU
    d1 = jnp.maximum(
        jnp.dot(w_d1_ref[...], cols0, preferred_element_type=f32) + b_d1_ref[...],
        0.0)                                                        # [Cout, HW]

    # --- side path: 1x1 stride-2 conv + BN == centre-tap slice of the same im2col
    side = jnp.dot(w_side_ref[...], cols0[4 * cin:5 * cin, :],
                   preferred_element_type=f32) + b_side_ref[...]    # [Cout, HW]

    masks = masks_ref[...]                                          # [9, HW]

    def shift_lanes(x, s):
        # out[:, m] = x[:, (m + s) mod HW]; wrapped lanes are zeroed by the mask.
        if s == 0:
            return x
        s = s % hw
        return jnp.concatenate([x[:, s:], x[:, :s]], axis=1)

    def conv3x3(act, w_taps_ref, b_ref):
        # 3x3 stride-1 pad-1 conv as nine shifted+masked [Cout,Cin]@[Cin,HW] matmuls
        # on the VMEM-resident activation slab (in-kernel im2col, no HBM traffic).
        acc = jnp.zeros((w_taps_ref.shape[1], hw), f32) + b_ref[...]
        for t in range(9):
            dh, dw = t // 3 - 1, t % 3 - 1
            xs = shift_lanes(act, dh * wo + dw) * masks[t:t + 1, :]
            acc = acc + jnp.dot(w_taps_ref[t], xs, preferred_element_type=f32)
        return acc

    # --- downsample conv2 (no act) + side residual:  y1 = BN(conv(d1)) + side
    y1 = conv3x3(d1, w_d2_ref, b_d2_ref) + side
    # --- out block:  o1 = relu(BN(conv(y1))) ; z = BN(conv(o1)) + y1
    o1 = jnp.maximum(conv3x3(y1, w_o1_ref, b_o1_ref), 0.0)
    z = conv3x3(o1, w_o2_ref, b_o2_ref) + y1                        # [C, HW]

    # --- SAGAN conv self-attention (Wq@Wk^T and gamma*Wv folded host-side)
    zq = jnp.dot(wqk_ref[...], z, preferred_element_type=f32)       # [C, HW]
    v = jnp.dot(wvg_ref[...], z, preferred_element_type=f32)        # [C, HW]
    # s[i, j] = sum_c zq[c, i] * z[c, j]   (no explicit transpose materialised)
    s_att = lax.dot_general(zq, z, (((0,), (0,)), ((), ())),
                            preferred_element_type=f32)             # [HW, HW]
    s_att = s_att - jnp.max(s_att, axis=-1, keepdims=True)
    p_att = jnp.exp(s_att)
    p_att = p_att / jnp.sum(p_att, axis=-1, keepdims=True)
    # o[c, i] = sum_j v[c, j] * p[i, j]
    o_att = lax.dot_general(v, p_att, (((1,), (1,)), ((), ())),
                            preferred_element_type=f32)             # [C, HW]
    o_ref[0] = o_att + z


# ----------------------------- host-side glue --------------------------------

def _im2col_cf(x_cf, ksize, stride, pad):
    """C-first im2col: x [C, N, H, W] -> cols^T [ksize*ksize*C, N*Ho*Wo]."""
    C, N, H, W = x_cf.shape
    if pad > 0:
        x_cf = jnp.pad(x_cf, ((0, 0), (0, 0), (pad, pad), (pad, pad)))
    Ho = (H + 2 * pad - ksize) // stride + 1
    Wo = (W + 2 * pad - ksize) // stride + 1
    patches = []
    for kh in range(ksize):
        for kw in range(ksize):
            patches.append(
                x_cf[:, :, kh:kh + (Ho - 1) * stride + 1:stride,
                           kw:kw + (Wo - 1) * stride + 1:stride])
    cols_t = jnp.concatenate(patches, axis=0)           # [(kh,kw,C), N, Ho, Wo]
    return cols_t.reshape(ksize * ksize * C, N * Ho * Wo)


def _fold_bn(gamma, beta, mean, var, eps=1e-5):
    scale = gamma / jnp.sqrt(var + eps)
    return scale, beta - mean * scale


def init_params(key, in_ch, out_ch):
    ks = jax.random.split(key, 16)

    def conv_w(k, cout, cin, ksz):
        return 0.1 * jax.random.normal(k, (cout, cin, ksz, ksz), jnp.float32)

    def bn(k, c):
        k1, k2, k3, k4 = jax.random.split(k, 4)
        g = 1.0 + 0.1 * jax.random.normal(k1, (c,), jnp.float32)
        b = 0.1 * jax.random.normal(k2, (c,), jnp.float32)
        m = 0.1 * jax.random.normal(k3, (c,), jnp.float32)
        v = 1.0 + 0.1 * jax.random.uniform(k4, (c,), jnp.float32)
        return _fold_bn(g, b, m, v)

    p = {}
    p["down1_w"] = conv_w(ks[0], out_ch, in_ch, 3)      # ConvLayer(in,out,stride 2)+relu
    p["down1_s"], p["down1_b"] = bn(ks[1], out_ch)
    p["down2_w"] = conv_w(ks[2], out_ch, out_ch, 3)     # ConvLayer(out,out) act='none'
    p["down2_s"], p["down2_b"] = bn(ks[3], out_ch)
    p["side_w"] = conv_w(ks[4], out_ch, in_ch, 1)       # 1x1 stride-2 conv + BN
    p["side_s"], p["side_b"] = bn(ks[5], out_ch)
    p["out1_w"] = conv_w(ks[6], out_ch, out_ch, 3)      # ConvBaseBlock conv1 + relu
    p["out1_s"], p["out1_b"] = bn(ks[7], out_ch)
    p["out2_w"] = conv_w(ks[8], out_ch, out_ch, 3)      # ConvBaseBlock conv2, no act
    p["out2_s"], p["out2_b"] = bn(ks[9], out_ch)
    dk = max(out_ch // 8, 1)
    p["wq"] = 0.1 * jax.random.normal(ks[10], (out_ch, dk), jnp.float32)
    p["wk"] = 0.1 * jax.random.normal(ks[11], (out_ch, dk), jnp.float32)
    p["wv"] = 0.1 * jax.random.normal(ks[12], (out_ch, out_ch), jnp.float32)
    p["gamma"] = jnp.float32(0.5)   # nonzero so the attention path is exercised
    return p


# ----------------------------- forward ---------------------------------------

@jax.jit
def forward(x_nchw, p):
    N, cin, H, W = x_nchw.shape
    cout = p["down1_w"].shape[0]
    Ho, Wo = H // 2, W // 2
    HW = Ho * Wo

    # im2col of the network input for the fused stride-2 (down1 + side) stage.
    x_cf = jnp.transpose(x_nchw, (1, 0, 2, 3))                      # [Cin, N, H, W]
    cols = _im2col_cf(x_cf, 3, 2, 1)                                # [9*Cin, N*HW]
    cols0 = jnp.transpose(cols.reshape(9 * cin, N, HW), (1, 0, 2))  # [N, 9*Cin, HW]

    def flat_w(w, scale):   # OIHW 3x3 -> [Cout, 9*Cin] (kh, kw, ci), BN scale folded
        co, ci, kh, kw = w.shape
        return jnp.transpose(w, (0, 2, 3, 1)).reshape(co, kh * kw * ci) * scale[:, None]

    def tap_w(w, scale):    # OIHW 3x3 -> [9, Cout, Cin] per-tap, BN scale folded
        ws = w * scale[:, None, None, None]
        return jnp.transpose(ws, (2, 3, 0, 1)).reshape(9, w.shape[0], w.shape[1])

    w_d1 = flat_w(p["down1_w"], p["down1_s"]);  b_d1 = p["down1_b"][:, None]
    w_side = p["side_w"][:, :, 0, 0] * p["side_s"][:, None]
    b_side = p["side_b"][:, None]
    w_d2 = tap_w(p["down2_w"], p["down2_s"]);   b_d2 = p["down2_b"][:, None]
    w_o1 = tap_w(p["out1_w"], p["out1_s"]);     b_o1 = p["out1_b"][:, None]
    w_o2 = tap_w(p["out2_w"], p["out2_s"]);     b_o2 = p["out2_b"][:, None]

    # fold attention projections:  s = zq^T z with zq = (Wk Wq^T) z ;  v = (gamma Wv)^T z
    wqk = p["wk"] @ p["wq"].T                                       # [C, C]
    wvg = (p["gamma"] * p["wv"]).T                                  # [C, C]

    # tap-validity masks for the stride-1 3x3 convs (shared by down2/out1/out2)
    hh = jnp.arange(HW) // Wo
    ww = jnp.arange(HW) % Wo
    masks = []
    for dh in (-1, 0, 1):
        for dw in (-1, 0, 1):
            masks.append((hh + dh >= 0) & (hh + dh < Ho) &
                         (ww + dw >= 0) & (ww + dw < Wo))
    masks = jnp.stack(masks).astype(jnp.float32)                    # [9, HW]

    const = lambda *_: tuple(0 for _ in _range)                     # placeholder (unused)

    out = pl.pallas_call(
        functools.partial(_fused_block_kernel, cin=cin, wo=Wo, hw=HW),
        out_shape=jax.ShapeDtypeStruct((N, cout, HW), jnp.float32),
        grid=(N,),
        in_specs=[
            pl.BlockSpec((1, 9 * cin, HW), lambda b: (b, 0, 0)),    # cols0 (per image)
            pl.BlockSpec((cout, 9 * cin), lambda b: (0, 0)),        # w_d1
            pl.BlockSpec((cout, 1), lambda b: (0, 0)),              # b_d1
            pl.BlockSpec((cout, cin), lambda b: (0, 0)),            # w_side
            pl.BlockSpec((cout, 1), lambda b: (0, 0)),              # b_side
            pl.BlockSpec((9, cout, cout), lambda b: (0, 0, 0)),     # w_d2 taps
            pl.BlockSpec((cout, 1), lambda b: (0, 0)),              # b_d2
            pl.BlockSpec((9, cout, cout), lambda b: (0, 0, 0)),     # w_o1 taps
            pl.BlockSpec((cout, 1), lambda b: (0, 0)),              # b_o1
            pl.BlockSpec((9, cout, cout), lambda b: (0, 0, 0)),     # w_o2 taps
            pl.BlockSpec((cout, 1), lambda b: (0, 0)),              # b_o2
            pl.BlockSpec((9, HW), lambda b: (0, 0)),                # masks
            pl.BlockSpec((cout, cout), lambda b: (0, 0)),           # wqk
            pl.BlockSpec((cout, cout), lambda b: (0, 0)),           # wvg
        ],
        out_specs=pl.BlockSpec((1, cout, HW), lambda b: (b, 0, 0)),
        compiler_params=pltpu.CompilerParams(dimension_semantics=("parallel",)),
    )(cols0, w_d1, b_d1, w_side, b_side,
      w_d2, b_d2, w_o1, b_o1, w_o2, b_o2, masks, wqk, wvg)

    return out.reshape(N, cout, Ho, Wo)                             # NCHW


# ----------------------------- reference (pure JAX) ---------------------------

def reference_forward(x, p):
    def cb(h, w, s, b, stride, pad, relu):
        y = lax.conv_general_dilated(
            h, w, (stride, stride), [(pad, pad), (pad, pad)],
            dimension_numbers=("NCHW", "OIHW", "NCHW"),
            precision=lax.Precision.HIGHEST)
        y = y * s[None, :, None, None] + b[None, :, None, None]
        return jnp.maximum(y, 0.0) if relu else y

    d1 = cb(x, p["down1_w"], p["down1_s"], p["down1_b"], 2, 1, True)
    d2 = cb(d1, p["down2_w"], p["down2_s"], p["down2_b"], 1, 1, False)
    side = cb(x, p["side_w"], p["side_s"], p["side_b"], 2, 0, False)
    y1 = d2 + side
    o1 = cb(y1, p["out1_w"], p["out1_s"], p["out1_b"], 1, 1, True)
    y2 = cb(o1, p["out2_w"], p["out2_s"], p["out2_b"], 1, 1, False)
    z = y1 + y2
    N, C, H, W = z.shape
    zs = jnp.transpose(z.reshape(N, C, H * W), (0, 2, 1))           # [N, HW, C]
    q = zs @ p["wq"]
    k = zs @ p["wk"]
    v = zs @ p["wv"]
    a = jax.nn.softmax(jnp.einsum("nqd,nkd->nqk", q, k), axis=-1)
    o = p["gamma"] * jnp.einsum("nqk,nkc->nqc", a, v) + zs
    return jnp.transpose(o, (0, 2, 1)).reshape(N, C, H, W)


# ----------------------------- main -------------------------------------------

if __name__ == "__main__":
    key = jax.random.PRNGKey(0)
    kx, kp = jax.random.split(key)
    batch, in_ch, out_ch, spatial = 2, 8, 16, 16

    x = jax.random.normal(kx, (batch, in_ch, spatial, spatial), jnp.float32)
    params = init_params(kp, in_ch, out_ch)

    out = jax.block_until_ready(forward(x, params))
    ref = jax.block_until_ready(reference_forward(x, params))

    assert out.shape == (batch, out_ch, spatial // 2, spatial // 2), out.shape
    assert bool(jnp.isfinite(out).all())
    max_err = float(jnp.max(jnp.abs(out - ref)))
    ref_scale = float(jnp.max(jnp.abs(ref)))
    # all-f32 math; tolerance covers MXU default-precision f32 matmuls on hardware.
    assert max_err <= 2e-2 * ref_scale, (
        f"mismatch vs reference, max abs err = {max_err}, ref scale = {ref_scale}")

    print("KERNEL_OK")
</pallas_src>

<mosaic_0001>
module attributes {stable_mosaic.version = 11 : i64} {
  func.func @_fused_block_kernel(%arg0: i32, %arg1: memref<1x72x64xf32, #tpu.memory_space<vmem>>, %arg2: memref<16x72xf32, #tpu.memory_space<vmem>>, %arg3: memref<16x1xf32, #tpu.memory_space<vmem>>, %arg4: memref<16x8xf32, #tpu.memory_space<vmem>>, %arg5: memref<16x1xf32, #tpu.memory_space<vmem>>, %arg6: memref<9x16x16xf32, #tpu.memory_space<vmem>>, %arg7: memref<16x1xf32, #tpu.memory_space<vmem>>, %arg8: memref<9x16x16xf32, #tpu.memory_space<vmem>>, %arg9: memref<16x1xf32, #tpu.memory_space<vmem>>, %arg10: memref<9x16x16xf32, #tpu.memory_space<vmem>>, %arg11: memref<16x1xf32, #tpu.memory_space<vmem>>, %arg12: memref<9x64xf32, #tpu.memory_space<vmem>>, %arg13: memref<16x16xf32, #tpu.memory_space<vmem>>, %arg14: memref<16x16xf32, #tpu.memory_space<vmem>>, %arg15: memref<1x16x64xf32, #tpu.memory_space<vmem>>) attributes {dimension_semantics = [#tpu.dimension_semantics<parallel>], iteration_bounds = array<i64: 2>, scalar_prefetch = 0 : i64, scratch_operands = 0 : i64, tpu.core_type = #tpu.core_type<tc>, window_params = [{transform_indices = @transform_0, window_bounds = array<i64: 1, 72, 64>}, {pipeline_mode = #tpu.pipeline_mode<synchronous>, transform_indices = @transform_1, window_bounds = array<i64: 16, 72>}, {pipeline_mode = #tpu.pipeline_mode<synchronous>, transform_indices = @transform_2, window_bounds = array<i64: 16, 1>}, {pipeline_mode = #tpu.pipeline_mode<synchronous>, transform_indices = @transform_3, window_bounds = array<i64: 16, 8>}, {pipeline_mode = #tpu.pipeline_mode<synchronous>, transform_indices = @transform_4, window_bounds = array<i64: 16, 1>}, {pipeline_mode = #tpu.pipeline_mode<synchronous>, transform_indices = @transform_5, window_bounds = array<i64: 9, 16, 16>}, {pipeline_mode = #tpu.pipeline_mode<synchronous>, transform_indices = @transform_6, window_bounds = array<i64: 16, 1>}, {pipeline_mode = #tpu.pipeline_mode<synchronous>, transform_indices = @transform_7, window_bounds = array<i64: 9, 16, 16>}, {pipeline_mode = #tpu.pipeline_mode<synchronous>, transform_indices = @transform_8, window_bounds = array<i64: 16, 1>}, {pipeline_mode = #tpu.pipeline_mode<synchronous>, transform_indices = @transform_9, window_bounds = array<i64: 9, 16, 16>}, {pipeline_mode = #tpu.pipeline_mode<synchronous>, transform_indices = @transform_10, window_bounds = array<i64: 16, 1>}, {pipeline_mode = #tpu.pipeline_mode<synchronous>, transform_indices = @transform_11, window_bounds = array<i64: 9, 64>}, {pipeline_mode = #tpu.pipeline_mode<synchronous>, transform_indices = @transform_12, window_bounds = array<i64: 16, 16>}, {pipeline_mode = #tpu.pipeline_mode<synchronous>, transform_indices = @transform_13, window_bounds = array<i64: 16, 16>}, {transform_indices = @transform_14, window_bounds = array<i64: 1, 16, 64>}]} {
    %c0 = arith.constant 0 : index
    %c0_0 = arith.constant 0 : index
    %c0_1 = arith.constant 0 : index
    %0 = vector.load %arg1[%c0, %c0_0, %c0_1] : memref<1x72x64xf32, #tpu.memory_space<vmem>>, vector<1x72x64xf32>
    %1 = vector.shape_cast %0 : vector<1x72x64xf32> to vector<72x64xf32>
    %c0_2 = arith.constant 0 : index
    %c0_3 = arith.constant 0 : index
    %2 = vector.load %arg2[%c0_2, %c0_3] : memref<16x72xf32, #tpu.memory_space<vmem>>, vector<16x72xf32>
    %cst = arith.constant dense<0.000000e+00> : vector<16x64xf32>
    %3 = tpu.matmul %2, %1, %cst {dimension_numbers = #tpu.dot_dimension_numbers<[1], [0], [0], [1], [0, 0, 1, 1], [], []>} : vector<16x72xf32>, vector<72x64xf32>, vector<16x64xf32> -> vector<16x64xf32>
    %c0_4 = arith.constant 0 : index
    %c0_5 = arith.constant 0 : index
    %4 = vector.load %arg3[%c0_4, %c0_5] : memref<16x1xf32, #tpu.memory_space<vmem>>, vector<16x1xf32>
    %5 = vector.broadcast %4 : vector<16x1xf32> to vector<16x64xf32>
    %6 = arith.addf %3, %5 : vector<16x64xf32>
    %cst_6 = arith.constant 0.000000e+00 : f32
    %7 = vector.broadcast %cst_6 : f32 to vector<16x64xf32>
    %8 = arith.maximumf %6, %7 : vector<16x64xf32>
    %c0_7 = arith.constant 0 : index
    %c0_8 = arith.constant 0 : index
    %9 = vector.load %arg4[%c0_7, %c0_8] : memref<16x8xf32, #tpu.memory_space<vmem>>, vector<16x8xf32>
    %10 = vector.extract_strided_slice %1 {offsets = [32, 0], sizes = [8, 64], strides = [1, 1]} : vector<72x64xf32> to vector<8x64xf32>
    %cst_9 = arith.constant dense<0.000000e+00> : vector<16x64xf32>
    %11 = tpu.matmul %9, %10, %cst_9 {dimension_numbers = #tpu.dot_dimension_numbers<[1], [0], [0], [1], [0, 0, 1, 1], [], []>} : vector<16x8xf32>, vector<8x64xf32>, vector<16x64xf32> -> vector<16x64xf32>
    %c0_10 = arith.constant 0 : index
    %c0_11 = arith.constant 0 : index
    %12 = vector.load %arg5[%c0_10, %c0_11] : memref<16x1xf32, #tpu.memory_space<vmem>>, vector<16x1xf32>
    %13 = vector.broadcast %12 : vector<16x1xf32> to vector<16x64xf32>
    %14 = arith.addf %11, %13 : vector<16x64xf32>
    %c0_12 = arith.constant 0 : index
    %c0_13 = arith.constant 0 : index
    %15 = vector.load %arg12[%c0_12, %c0_13] : memref<9x64xf32, #tpu.memory_space<vmem>>, vector<9x64xf32>
    %cst_14 = arith.constant 0.000000e+00 : f32
    %16 = vector.broadcast %cst_14 : f32 to vector<16x64xf32>
    %c0_15 = arith.constant 0 : index
    %c0_16 = arith.constant 0 : index
    %17 = vector.load %arg7[%c0_15, %c0_16] : memref<16x1xf32, #tpu.memory_space<vmem>>, vector<16x1xf32>
    %18 = vector.broadcast %17 : vector<16x1xf32> to vector<16x64xf32>
    %19 = arith.addf %16, %18 : vector<16x64xf32>
    %20 = vector.extract_strided_slice %8 {offsets = [0, 55], sizes = [16, 9], strides = [1, 1]} : vector<16x64xf32> to vector<16x9xf32>
    %21 = vector.extract_strided_slice %8 {offsets = [0, 0], sizes = [16, 55], strides = [1, 1]} : vector<16x64xf32> to vector<16x55xf32>
    %22 = tpu.concatenate %20, %21 in 1 : vector<16x9xf32>, vector<16x55xf32> -> vector<16x64xf32>
    %23 = vector.extract_strided_slice %15 {offsets = [0, 0], sizes = [1, 64], strides = [1, 1]} : vector<9x64xf32> to vector<1x64xf32>
    %24 = vector.broadcast %23 : vector<1x64xf32> to vector<16x64xf32>
    %25 = arith.mulf %22, %24 : vector<16x64xf32>
    %c0_17 = arith.constant 0 : index
    %c0_18 = arith.constant 0 : index
    %c0_19 = arith.constant 0 : index
    %26 = vector.load %arg6[%c0_17, %c0_18, %c0_19] : memref<9x16x16xf32, #tpu.memory_space<vmem>>, vector<1x16x16xf32>
    %27 = vector.shape_cast %26 : vector<1x16x16xf32> to vector<16x16xf32>
    %cst_20 = arith.constant dense<0.000000e+00> : vector<16x64xf32>
    %28 = tpu.matmul %27, %25, %cst_20 {dimension_numbers = #tpu.dot_dimension_numbers<[1], [0], [0], [1], [0, 0, 1, 1], [], []>} : vector<16x16xf32>, vector<16x64xf32>, vector<16x64xf32> -> vector<16x64xf32>
    %29 = arith.addf %19, %28 : vector<16x64xf32>
    %30 = vector.extract_strided_slice %8 {offsets = [0, 56], sizes = [16, 8], strides = [1, 1]} : vector<16x64xf32> to vector<16x8xf32>
    %31 = vector.extract_strided_slice %8 {offsets = [0, 0], sizes = [16, 56], strides = [1, 1]} : vector<16x64xf32> to vector<16x56xf32>
    %32 = tpu.concatenate %30, %31 in 1 : vector<16x8xf32>, vector<16x56xf32> -> vector<16x64xf32>
    %33 = vector.extract_strided_slice %15 {offsets = [1, 0], sizes = [1, 64], strides = [1, 1]} : vector<9x64xf32> to vector<1x64xf32>
    %34 = vector.broadcast %33 : vector<1x64xf32> to vector<16x64xf32>
    %35 = arith.mulf %32, %34 : vector<16x64xf32>
    %c1 = arith.constant 1 : index
    %c0_21 = arith.constant 0 : index
    %c0_22 = arith.constant 0 : index
    %36 = vector.load %arg6[%c1, %c0_21, %c0_22] : memref<9x16x16xf32, #tpu.memory_space<vmem>>, vector<1x16x16xf32>
    %37 = vector.shape_cast %36 : vector<1x16x16xf32> to vector<16x16xf32>
    %cst_23 = arith.constant dense<0.000000e+00> : vector<16x64xf32>
    %38 = tpu.matmul %37, %35, %cst_23 {dimension_numbers = #tpu.dot_dimension_numbers<[1], [0], [0], [1], [0, 0, 1, 1], [], []>} : vector<16x16xf32>, vector<16x64xf32>, vector<16x64xf32> -> vector<16x64xf32>
    %39 = arith.addf %29, %38 : vector<16x64xf32>
    %40 = vector.extract_strided_slice %8 {offsets = [0, 57], sizes = [16, 7], strides = [1, 1]} : vector<16x64xf32> to vector<16x7xf32>
    %41 = vector.extract_strided_slice %8 {offsets = [0, 0], sizes = [16, 57], strides = [1, 1]} : vector<16x64xf32> to vector<16x57xf32>
    %42 = tpu.concatenate %40, %41 in 1 : vector<16x7xf32>, vector<16x57xf32> -> vector<16x64xf32>
    %43 = vector.extract_strided_slice %15 {offsets = [2, 0], sizes = [1, 64], strides = [1, 1]} : vector<9x64xf32> to vector<1x64xf32>
    %44 = vector.broadcast %43 : vector<1x64xf32> to vector<16x64xf32>
    %45 = arith.mulf %42, %44 : vector<16x64xf32>
    %c2 = arith.constant 2 : index
    %c0_24 = arith.constant 0 : index
    %c0_25 = arith.constant 0 : index
    %46 = vector.load %arg6[%c2, %c0_24, %c0_25] : memref<9x16x16xf32, #tpu.memory_space<vmem>>, vector<1x16x16xf32>
    %47 = vector.shape_cast %46 : vector<1x16x16xf32> to vector<16x16xf32>
    %cst_26 = arith.constant dense<0.000000e+00> : vector<16x64xf32>
    %48 = tpu.matmul %47, %45, %cst_26 {dimension_numbers = #tpu.dot_dimension_numbers<[1], [0], [0], [1], [0, 0, 1, 1], [], []>} : vector<16x16xf32>, vector<16x64xf32>, vector<16x64xf32> -> vector<16x64xf32>
    %49 = arith.addf %39, %48 : vector<16x64xf32>
    %50 = vector.extract_strided_slice %8 {offsets = [0, 63], sizes = [16, 1], strides = [1, 1]} : vector<16x64xf32> to vector<16x1xf32>
    %51 = vector.extract_strided_slice %8 {offsets = [0, 0], sizes = [16, 63], strides = [1, 1]} : vector<16x64xf32> to vector<16x63xf32>
    %52 = tpu.concatenate %50, %51 in 1 : vector<16x1xf32>, vector<16x63xf32> -> vector<16x64xf32>
    %53 = vector.extract_strided_slice %15 {offsets = [3, 0], sizes = [1, 64], strides = [1, 1]} : vector<9x64xf32> to vector<1x64xf32>
    %54 = vector.broadcast %53 : vector<1x64xf32> to vector<16x64xf32>
    %55 = arith.mulf %52, %54 : vector<16x64xf32>
    %c3 = arith.constant 3 : index
    %c0_27 = arith.constant 0 : index
    %c0_28 = arith.constant 0 : index
    %56 = vector.load %arg6[%c3, %c0_27, %c0_28] : memref<9x16x16xf32, #tpu.memory_space<vmem>>, vector<1x16x16xf32>
    %57 = vector.shape_cast %56 : vector<1x16x16xf32> to vector<16x16xf32>
    %cst_29 = arith.constant dense<0.000000e+00> : vector<16x64xf32>
    %58 = tpu.matmul %57, %55, %cst_29 {dimension_numbers = #tpu.dot_dimension_numbers<[1], [0], [0], [1], [0, 0, 1, 1], [], []>} : vector<16x16xf32>, vector<16x64xf32>, vector<16x64xf32> -> vector<16x64xf32>
    %59 = arith.addf %49, %58 : vector<16x64xf32>
    %60 = vector.extract_strided_slice %15 {offsets = [4, 0], sizes = [1, 64], strides = [1, 1]} : vector<9x64xf32> to vector<1x64xf32>
    %61 = vector.broadcast %60 : vector<1x64xf32> to vector<16x64xf32>
    %62 = arith.mulf %8, %61 : vector<16x64xf32>
    %c4 = arith.constant 4 : index
    %c0_30 = arith.constant 0 : index
    %c0_31 = arith.constant 0 : index
    %63 = vector.load %arg6[%c4, %c0_30, %c0_31] : memref<9x16x16xf32, #tpu.memory_space<vmem>>, vector<1x16x16xf32>
    %64 = vector.shape_cast %63 : vector<1x16x16xf32> to vector<16x16xf32>
    %cst_32 = arith.constant dense<0.000000e+00> : vector<16x64xf32>
    %65 = tpu.matmul %64, %62, %cst_32 {dimension_numbers = #tpu.dot_dimension_numbers<[1], [0], [0], [1], [0, 0, 1, 1], [], []>} : vector<16x16xf32>, vector<16x64xf32>, vector<16x64xf32> -> vector<16x64xf32>
    %66 = arith.addf %59, %65 : vector<16x64xf32>
    %67 = vector.extract_strided_slice %8 {offsets = [0, 1], sizes = [16, 63], strides = [1, 1]} : vector<16x64xf32> to vector<16x63xf32>
    %68 = vector.extract_strided_slice %8 {offsets = [0, 0], sizes = [16, 1], strides = [1, 1]} : vector<16x64xf32> to vector<16x1xf32>
    %69 = tpu.concatenate %67, %68 in 1 : vector<16x63xf32>, vector<16x1xf32> -> vector<16x64xf32>
    %70 = vector.extract_strided_slice %15 {offsets = [5, 0], sizes = [1, 64], strides = [1, 1]} : vector<9x64xf32> to vector<1x64xf32>
    %71 = vector.broadcast %70 : vector<1x64xf32> to vector<16x64xf32>
    %72 = arith.mulf %69, %71 : vector<16x64xf32>
    %c5 = arith.constant 5 : index
    %c0_33 = arith.constant 0 : index
    %c0_34 = arith.constant 0 : index
    %73 = vector.load %arg6[%c5, %c0_33, %c0_34] : memref<9x16x16xf32, #tpu.memory_space<vmem>>, vector<1x16x16xf32>
    %74 = vector.shape_cast %73 : vector<1x16x16xf32> to vector<16x16xf32>
    %cst_35 = arith.constant dense<0.000000e+00> : vector<16x64xf32>
    %75 = tpu.matmul %74, %72, %cst_35 {dimension_numbers = #tpu.dot_dimension_numbers<[1], [0], [0], [1], [0, 0, 1, 1], [], []>} : vector<16x16xf32>, vector<16x64xf32>, vector<16x64xf32> -> vector<16x64xf32>
    %76 = arith.addf %66, %75 : vector<16x64xf32>
    %77 = vector.extract_strided_slice %8 {offsets = [0, 7], sizes = [16, 57], strides = [1, 1]} : vector<16x64xf32> to vector<16x57xf32>
    %78 = vector.extract_strided_slice %8 {offsets = [0, 0], sizes = [16, 7], strides = [1, 1]} : vector<16x64xf32> to vector<16x7xf32>
    %79 = tpu.concatenate %77, %78 in 1 : vector<16x57xf32>, vector<16x7xf32> -> vector<16x64xf32>
    %80 = vector.extract_strided_slice %15 {offsets = [6, 0], sizes = [1, 64], strides = [1, 1]} : vector<9x64xf32> to vector<1x64xf32>
    %81 = vector.broadcast %80 : vector<1x64xf32> to vector<16x64xf32>
    %82 = arith.mulf %79, %81 : vector<16x64xf32>
    %c6 = arith.constant 6 : index
    %c0_36 = arith.constant 0 : index
    %c0_37 = arith.constant 0 : index
    %83 = vector.load %arg6[%c6, %c0_36, %c0_37] : memref<9x16x16xf32, #tpu.memory_space<vmem>>, vector<1x16x16xf32>
    %84 = vector.shape_cast %83 : vector<1x16x16xf32> to vector<16x16xf32>
    %cst_38 = arith.constant dense<0.000000e+00> : vector<16x64xf32>
    %85 = tpu.matmul %84, %82, %cst_38 {dimension_numbers = #tpu.dot_dimension_numbers<[1], [0], [0], [1], [0, 0, 1, 1], [], []>} : vector<16x16xf32>, vector<16x64xf32>, vector<16x64xf32> -> vector<16x64xf32>
    %86 = arith.addf %76, %85 : vector<16x64xf32>
    %87 = vector.extract_strided_slice %8 {offsets = [0, 8], sizes = [16, 56], strides = [1, 1]} : vector<16x64xf32> to vector<16x56xf32>
    %88 = vector.extract_strided_slice %8 {offsets = [0, 0], sizes = [16, 8], strides = [1, 1]} : vector<16x64xf32> to vector<16x8xf32>
    %89 = tpu.concatenate %87, %88 in 1 : vector<16x56xf32>, vector<16x8xf32> -> vector<16x64xf32>
    %90 = vector.extract_strided_slice %15 {offsets = [7, 0], sizes = [1, 64], strides = [1, 1]} : vector<9x64xf32> to vector<1x64xf32>
    %91 = vector.broadcast %90 : vector<1x64xf32> to vector<16x64xf32>
    %92 = arith.mulf %89, %91 : vector<16x64xf32>
    %c7 = arith.constant 7 : index
    %c0_39 = arith.constant 0 : index
    %c0_40 = arith.constant 0 : index
    %93 = vector.load %arg6[%c7, %c0_39, %c0_40] : memref<9x16x16xf32, #tpu.memory_space<vmem>>, vector<1x16x16xf32>
    %94 = vector.shape_cast %93 : vector<1x16x16xf32> to vector<16x16xf32>
    %cst_41 = arith.constant dense<0.000000e+00> : vector<16x64xf32>
    %95 = tpu.matmul %94, %92, %cst_41 {dimension_numbers = #tpu.dot_dimension_numbers<[1], [0], [0], [1], [0, 0, 1, 1], [], []>} : vector<16x16xf32>, vector<16x64xf32>, vector<16x64xf32> -> vector<16x64xf32>
    %96 = arith.addf %86, %95 : vector<16x64xf32>
    %97 = vector.extract_strided_slice %8 {offsets = [0, 9], sizes = [16, 55], strides = [1, 1]} : vector<16x64xf32> to vector<16x55xf32>
    %98 = vector.extract_strided_slice %8 {offsets = [0, 0], sizes = [16, 9], strides = [1, 1]} : vector<16x64xf32> to vector<16x9xf32>
    %99 = tpu.concatenate %97, %98 in 1 : vector<16x55xf32>, vector<16x9xf32> -> vector<16x64xf32>
    %100 = vector.extract_strided_slice %15 {offsets = [8, 0], sizes = [1, 64], strides = [1, 1]} : vector<9x64xf32> to vector<1x64xf32>
    %101 = vector.broadcast %100 : vector<1x64xf32> to vector<16x64xf32>
    %102 = arith.mulf %99, %101 : vector<16x64xf32>
    %c8 = arith.constant 8 : index
    %c0_42 = arith.constant 0 : index
    %c0_43 = arith.constant 0 : index
    %103 = vector.load %arg6[%c8, %c0_42, %c0_43] : memref<9x16x16xf32, #tpu.memory_space<vmem>>, vector<1x16x16xf32>
    %104 = vector.shape_cast %103 : vector<1x16x16xf32> to vector<16x16xf32>
    %cst_44 = arith.constant dense<0.000000e+00> : vector<16x64xf32>
    %105 = tpu.matmul %104, %102, %cst_44 {dimension_numbers = #tpu.dot_dimension_numbers<[1], [0], [0], [1], [0, 0, 1, 1], [], []>} : vector<16x16xf32>, vector<16x64xf32>, vector<16x64xf32> -> vector<16x64xf32>
    %106 = arith.addf %96, %105 : vector<16x64xf32>
    %107 = arith.addf %106, %14 : vector<16x64xf32>
    %cst_45 = arith.constant 0.000000e+00 : f32
    %108 = vector.broadcast %cst_45 : f32 to vector<16x64xf32>
    %c0_46 = arith.constant 0 : index
    %c0_47 = arith.constant 0 : index
    %109 = vector.load %arg9[%c0_46, %c0_47] : memref<16x1xf32, #tpu.memory_space<vmem>>, vector<16x1xf32>
    %110 = vector.broadcast %109 : vector<16x1xf32> to vector<16x64xf32>
    %111 = arith.addf %108, %110 : vector<16x64xf32>
    %112 = vector.extract_strided_slice %107 {offsets = [0, 55], sizes = [16, 9], strides = [1, 1]} : vector<16x64xf32> to vector<16x9xf32>
    %113 = vector.extract_strided_slice %107 {offsets = [0, 0], sizes = [16, 55], strides = [1, 1]} : vector<16x64xf32> to vector<16x55xf32>
    %114 = tpu.concatenate %112, %113 in 1 : vector<16x9xf32>, vector<16x55xf32> -> vector<16x64xf32>
    %115 = vector.extract_strided_slice %15 {offsets = [0, 0], sizes = [1, 64], strides = [1, 1]} : vector<9x64xf32> to vector<1x64xf32>
    %116 = vector.broadcast %115 : vector<1x64xf32> to vector<16x64xf32>
    %117 = arith.mulf %114, %116 : vector<16x64xf32>
    %c0_48 = arith.constant 0 : index
    %c0_49 = arith.constant 0 : index
    %c0_50 = arith.constant 0 : index
    %118 = vector.load %arg8[%c0_48, %c0_49, %c0_50] : memref<9x16x16xf32, #tpu.memory_space<vmem>>, vector<1x16x16xf32>
    %119 = vector.shape_cast %118 : vector<1x16x16xf32> to vector<16x16xf32>
    %cst_51 = arith.constant dense<0.000000e+00> : vector<16x64xf32>
    %120 = tpu.matmul %119, %117, %cst_51 {dimension_numbers = #tpu.dot_dimension_numbers<[1], [0], [0], [1], [0, 0, 1, 1], [], []>} : vector<16x16xf32>, vector<16x64xf32>, vector<16x64xf32> -> vector<16x64xf32>
    %121 = arith.addf %111, %120 : vector<16x64xf32>
    %122 = vector.extract_strided_slice %107 {offsets = [0, 56], sizes = [16, 8], strides = [1, 1]} : vector<16x64xf32> to vector<16x8xf32>
    %123 = vector.extract_strided_slice %107 {offsets = [0, 0], sizes = [16, 56], strides = [1, 1]} : vector<16x64xf32> to vector<16x56xf32>
    %124 = tpu.concatenate %122, %123 in 1 : vector<16x8xf32>, vector<16x56xf32> -> vector<16x64xf32>
    %125 = vector.extract_strided_slice %15 {offsets = [1, 0], sizes = [1, 64], strides = [1, 1]} : vector<9x64xf32> to vector<1x64xf32>
    %126 = vector.broadcast %125 : vector<1x64xf32> to vector<16x64xf32>
    %127 = arith.mulf %124, %126 : vector<16x64xf32>
    %c1_52 = arith.constant 1 : index
    %c0_53 = arith.constant 0 : index
    %c0_54 = arith.constant 0 : index
    %128 = vector.load %arg8[%c1_52, %c0_53, %c0_54] : memref<9x16x16xf32, #tpu.memory_space<vmem>>, vector<1x16x16xf32>
    %129 = vector.shape_cast %128 : vector<1x16x16xf32> to vector<16x16xf32>
    %cst_55 = arith.constant dense<0.000000e+00> : vector<16x64xf32>
    %130 = tpu.matmul %129, %127, %cst_55 {dimension_numbers = #tpu.dot_dimension_numbers<[1], [0], [0], [1], [0, 0, 1, 1], [], []>} : vector<16x16xf32>, vector<16x64xf32>, vector<16x64xf32> -> vector<16x64xf32>
    %131 = arith.addf %121, %130 : vector<16x64xf32>
    %132 = vector.extract_strided_slice %107 {offsets = [0, 57], sizes = [16, 7], strides = [1, 1]} : vector<16x64xf32> to vector<16x7xf32>
    %133 = vector.extract_strided_slice %107 {offsets = [0, 0], sizes = [16, 57], strides = [1, 1]} : vector<16x64xf32> to vector<16x57xf32>
    %134 = tpu.concatenate %132, %133 in 1 : vector<16x7xf32>, vector<16x57xf32> -> vector<16x64xf32>
    %135 = vector.extract_strided_slice %15 {offsets = [2, 0], sizes = [1, 64], strides = [1, 1]} : vector<9x64xf32> to vector<1x64xf32>
    %136 = vector.broadcast %135 : vector<1x64xf32> to vector<16x64xf32>
    %137 = arith.mulf %134, %136 : vector<16x64xf32>
    %c2_56 = arith.constant 2 : index
    %c0_57 = arith.constant 0 : index
    %c0_58 = arith.constant 0 : index
    %138 = vector.load %arg8[%c2_56, %c0_57, %c0_58] : memref<9x16x16xf32, #tpu.memory_space<vmem>>, vector<1x16x16xf32>
    %139 = vector.shape_cast %138 : vector<1x16x16xf32> to vector<16x16xf32>
    %cst_59 = arith.constant dense<0.000000e+00> : vector<16x64xf32>
    %140 = tpu.matmul %139, %137, %cst_59 {dimension_numbers = #tpu.dot_dimension_numbers<[1], [0], [0], [1], [0, 0, 1, 1], [], []>} : vector<16x16xf32>, vector<16x64xf32>, vector<16x64xf32> -> vector<16x64xf32>
    %141 = arith.addf %131, %140 : vector<16x64xf32>
    %142 = vector.extract_strided_slice %107 {offsets = [0, 63], sizes = [16, 1], strides = [1, 1]} : vector<16x64xf32> to vector<16x1xf32>
    %143 = vector.extract_strided_slice %107 {offsets = [0, 0], sizes = [16, 63], strides = [1, 1]} : vector<16x64xf32> to vector<16x63xf32>
    %144 = tpu.concatenate %142, %143 in 1 : vector<16x1xf32>, vector<16x63xf32> -> vector<16x64xf32>
    %145 = vector.extract_strided_slice %15 {offsets = [3, 0], sizes = [1, 64], strides = [1, 1]} : vector<9x64xf32> to vector<1x64xf32>
    %146 = vector.broadcast %145 : vector<1x64xf32> to vector<16x64xf32>
    %147 = arith.mulf %144, %146 : vector<16x64xf32>
    %c3_60 = arith.constant 3 : index
    %c0_61 = arith.constant 0 : index
    %c0_62 = arith.constant 0 : index
    %148 = vector.load %arg8[%c3_60, %c0_61, %c0_62] : memref<9x16x16xf32, #tpu.memory_space<vmem>>, vector<1x16x16xf32>
    %149 = vector.shape_cast %148 : vector<1x16x16xf32> to vector<16x16xf32>
    %cst_63 = arith.constant dense<0.000000e+00> : vector<16x64xf32>
    %150 = tpu.matmul %149, %147, %cst_63 {dimension_numbers = #tpu.dot_dimension_numbers<[1], [0], [0], [1], [0, 0, 1, 1], [], []>} : vector<16x16xf32>, vector<16x64xf32>, vector<16x64xf32> -> vector<16x64xf32>
    %151 = arith.addf %141, %150 : vector<16x64xf32>
    %152 = vector.extract_strided_slice %15 {offsets = [4, 0], sizes = [1, 64], strides = [1, 1]} : vector<9x64xf32> to vector<1x64xf32>
    %153 = vector.broadcast %152 : vector<1x64xf32> to vector<16x64xf32>
    %154 = arith.mulf %107, %153 : vector<16x64xf32>
    %c4_64 = arith.constant 4 : index
    %c0_65 = arith.constant 0 : index
    %c0_66 = arith.constant 0 : index
    %155 = vector.load %arg8[%c4_64, %c0_65, %c0_66] : memref<9x16x16xf32, #tpu.memory_space<vmem>>, vector<1x16x16xf32>
    %156 = vector.shape_cast %155 : vector<1x16x16xf32> to vector<16x16xf32>
    %cst_67 = arith.constant dense<0.000000e+00> : vector<16x64xf32>
    %157 = tpu.matmul %156, %154, %cst_67 {dimension_numbers = #tpu.dot_dimension_numbers<[1], [0], [0], [1], [0, 0, 1, 1], [], []>} : vector<16x16xf32>, vector<16x64xf32>, vector<16x64xf32> -> vector<16x64xf32>
    %158 = arith.addf %151, %157 : vector<16x64xf32>
    %159 = vector.extract_strided_slice %107 {offsets = [0, 1], sizes = [16, 63], strides = [1, 1]} : vector<16x64xf32> to vector<16x63xf32>
    %160 = vector.extract_strided_slice %107 {offsets = [0, 0], sizes = [16, 1], strides = [1, 1]} : vector<16x64xf32> to vector<16x1xf32>
    %161 = tpu.concatenate %159, %160 in 1 : vector<16x63xf32>, vector<16x1xf32> -> vector<16x64xf32>
    %162 = vector.extract_strided_slice %15 {offsets = [5, 0], sizes = [1, 64], strides = [1, 1]} : vector<9x64xf32> to vector<1x64xf32>
    %163 = vector.broadcast %162 : vector<1x64xf32> to vector<16x64xf32>
    %164 = arith.mulf %161, %163 : vector<16x64xf32>
    %c5_68 = arith.constant 5 : index
    %c0_69 = arith.constant 0 : index
    %c0_70 = arith.constant 0 : index
    %165 = vector.load %arg8[%c5_68, %c0_69, %c0_70] : memref<9x16x16xf32, #tpu.memory_space<vmem>>, vector<1x16x16xf32>
    %166 = vector.shape_cast %165 : vector<1x16x16xf32> to vector<16x16xf32>
    %cst_71 = arith.constant dense<0.000000e+00> : vector<16x64xf32>
    %167 = tpu.matmul %166, %164, %cst_71 {dimension_numbers = #tpu.dot_dimension_numbers<[1], [0], [0], [1], [0, 0, 1, 1], [], []>} : vector<16x16xf32>, vector<16x64xf32>, vector<16x64xf32> -> vector<16x64xf32>
    %168 = arith.addf %158, %167 : vector<16x64xf32>
    %169 = vector.extract_strided_slice %107 {offsets = [0, 7], sizes = [16, 57], strides = [1, 1]} : vector<16x64xf32> to vector<16x57xf32>
    %170 = vector.extract_strided_slice %107 {offsets = [0, 0], sizes = [16, 7], strides = [1, 1]} : vector<16x64xf32> to vector<16x7xf32>
    %171 = tpu.concatenate %169, %170 in 1 : vector<16x57xf32>, vector<16x7xf32> -> vector<16x64xf32>
    %172 = vector.extract_strided_slice %15 {offsets = [6, 0], sizes = [1, 64], strides = [1, 1]} : vector<9x64xf32> to vector<1x64xf32>
    %173 = vector.broadcast %172 : vector<1x64xf32> to vector<16x64xf32>
    %174 = arith.mulf %171, %173 : vector<16x64xf32>
    %c6_72 = arith.constant 6 : index
    %c0_73 = arith.constant 0 : index
    %c0_74 = arith.constant 0 : index
    %175 = vector.load %arg8[%c6_72, %c0_73, %c0_74] : memref<9x16x16xf32, #tpu.memory_space<vmem>>, vector<1x16x16xf32>
    %176 = vector.shape_cast %175 : vector<1x16x16xf32> to vector<16x16xf32>
    %cst_75 = arith.constant dense<0.000000e+00> : vector<16x64xf32>
    %177 = tpu.matmul %176, %174, %cst_75 {dimension_numbers = #tpu.dot_dimension_numbers<[1], [0], [0], [1], [0, 0, 1, 1], [], []>} : vector<16x16xf32>, vector<16x64xf32>, vector<16x64xf32> -> vector<16x64xf32>
    %178 = arith.addf %168, %177 : vector<16x64xf32>
    %179 = vector.extract_strided_slice %107 {offsets = [0, 8], sizes = [16, 56], strides = [1, 1]} : vector<16x64xf32> to vector<16x56xf32>
    %180 = vector.extract_strided_slice %107 {offsets = [0, 0], sizes = [16, 8], strides = [1, 1]} : vector<16x64xf32> to vector<16x8xf32>
    %181 = tpu.concatenate %179, %180 in 1 : vector<16x56xf32>, vector<16x8xf32> -> vector<16x64xf32>
    %182 = vector.extract_strided_slice %15 {offsets = [7, 0], sizes = [1, 64], strides = [1, 1]} : vector<9x64xf32> to vector<1x64xf32>
    %183 = vector.broadcast %182 : vector<1x64xf32> to vector<16x64xf32>
    %184 = arith.mulf %181, %183 : vector<16x64xf32>
    %c7_76 = arith.constant 7 : index
    %c0_77 = arith.constant 0 : index
    %c0_78 = arith.constant 0 : index
    %185 = vector.load %arg8[%c7_76, %c0_77, %c0_78] : memref<9x16x16xf32, #tpu.memory_space<vmem>>, vector<1x16x16xf32>
    %186 = vector.shape_cast %185 : vector<1x16x16xf32> to vector<16x16xf32>
    %cst_79 = arith.constant dense<0.000000e+00> : vector<16x64xf32>
    %187 = tpu.matmul %186, %184, %cst_79 {dimension_numbers = #tpu.dot_dimension_numbers<[1], [0], [0], [1], [0, 0, 1, 1], [], []>} : vector<16x16xf32>, vector<16x64xf32>, vector<16x64xf32> -> vector<16x64xf32>
    %188 = arith.addf %178, %187 : vector<16x64xf32>
    %189 = vector.extract_strided_slice %107 {offsets = [0, 9], sizes = [16, 55], strides = [1, 1]} : vector<16x64xf32> to vector<16x55xf32>
    %190 = vector.extract_strided_slice %107 {offsets = [0, 0], sizes = [16, 9], strides = [1, 1]} : vector<16x64xf32> to vector<16x9xf32>
    %191 = tpu.concatenate %189, %190 in 1 : vector<16x55xf32>, vector<16x9xf32> -> vector<16x64xf32>
    %192 = vector.extract_strided_slice %15 {offsets = [8, 0], sizes = [1, 64], strides = [1, 1]} : vector<9x64xf32> to vector<1x64xf32>
    %193 = vector.broadcast %192 : vector<1x64xf32> to vector<16x64xf32>
    %194 = arith.mulf %191, %193 : vector<16x64xf32>
    %c8_80 = arith.constant 8 : index
    %c0_81 = arith.constant 0 : index
    %c0_82 = arith.constant 0 : index
    %195 = vector.load %arg8[%c8_80, %c0_81, %c0_82] : memref<9x16x16xf32, #tpu.memory_space<vmem>>, vector<1x16x16xf32>
    %196 = vector.shape_cast %195 : vector<1x16x16xf32> to vector<16x16xf32>
    %cst_83 = arith.constant dense<0.000000e+00> : vector<16x64xf32>
    %197 = tpu.matmul %196, %194, %cst_83 {dimension_numbers = #tpu.dot_dimension_numbers<[1], [0], [0], [1], [0, 0, 1, 1], [], []>} : vector<16x16xf32>, vector<16x64xf32>, vector<16x64xf32> -> vector<16x64xf32>
    %198 = arith.addf %188, %197 : vector<16x64xf32>
    %cst_84 = arith.constant 0.000000e+00 : f32
    %199 = vector.broadcast %cst_84 : f32 to vector<16x64xf32>
    %200 = arith.maximumf %198, %199 : vector<16x64xf32>
    %cst_85 = arith.constant 0.000000e+00 : f32
    %201 = vector.broadcast %cst_85 : f32 to vector<16x64xf32>
    %c0_86 = arith.constant 0 : index
    %c0_87 = arith.constant 0 : index
    %202 = vector.load %arg11[%c0_86, %c0_87] : memref<16x1xf32, #tpu.memory_space<vmem>>, vector<16x1xf32>
    %203 = vector.broadcast %202 : vector<16x1xf32> to vector<16x64xf32>
    %204 = arith.addf %201, %203 : vector<16x64xf32>
    %205 = vector.extract_strided_slice %200 {offsets = [0, 55], sizes = [16, 9], strides = [1, 1]} : vector<16x64xf32> to vector<16x9xf32>
    %206 = vector.extract_strided_slice %200 {offsets = [0, 0], sizes = [16, 55], strides = [1, 1]} : vector<16x64xf32> to vector<16x55xf32>
    %207 = tpu.concatenate %205, %206 in 1 : vector<16x9xf32>, vector<16x55xf32> -> vector<16x64xf32>
    %208 = vector.extract_strided_slice %15 {offsets = [0, 0], sizes = [1, 64], strides = [1, 1]} : vector<9x64xf32> to vector<1x64xf32>
    %209 = vector.broadcast %208 : vector<1x64xf32> to vector<16x64xf32>
    %210 = arith.mulf %207, %209 : vector<16x64xf32>
    %c0_88 = arith.constant 0 : index
    %c0_89 = arith.constant 0 : index
    %c0_90 = arith.constant 0 : index
    %211 = vector.load %arg10[%c0_88, %c0_89, %c0_90] : memref<9x16x16xf32, #tpu.memory_space<vmem>>, vector<1x16x16xf32>
    %212 = vector.shape_cast %211 : vector<1x16x16xf32> to vector<16x16xf32>
    %cst_91 = arith.constant dense<0.000000e+00> : vector<16x64xf32>
    %213 = tpu.matmul %212, %210, %cst_91 {dimension_numbers = #tpu.dot_dimension_numbers<[1], [0], [0], [1], [0, 0, 1, 1], [], []>} : vector<16x16xf32>, vector<16x64xf32>, vector<16x64xf32> -> vector<16x64xf32>
    %214 = arith.addf %204, %213 : vector<16x64xf32>
    %215 = vector.extract_strided_slice %200 {offsets = [0, 56], sizes = [16, 8], strides = [1, 1]} : vector<16x64xf32> to vector<16x8xf32>
    %216 = vector.extract_strided_slice %200 {offsets = [0, 0], sizes = [16, 56], strides = [1, 1]} : vector<16x64xf32> to vector<16x56xf32>
    %217 = tpu.concatenate %215, %216 in 1 : vector<16x8xf32>, vector<16x56xf32> -> vector<16x64xf32>
    %218 = vector.extract_strided_slice %15 {offsets = [1, 0], sizes = [1, 64], strides = [1, 1]} : vector<9x64xf32> to vector<1x64xf32>
    %219 = vector.broadcast %218 : vector<1x64xf32> to vector<16x64xf32>
    %220 = arith.mulf %217, %219 : vector<16x64xf32>
    %c1_92 = arith.constant 1 : index
    %c0_93 = arith.constant 0 : index
    %c0_94 = arith.constant 0 : index
    %221 = vector.load %arg10[%c1_92, %c0_93, %c0_94] : memref<9x16x16xf32, #tpu.memory_space<vmem>>, vector<1x16x16xf32>
    %222 = vector.shape_cast %221 : vector<1x16x16xf32> to vector<16x16xf32>
    %cst_95 = arith.constant dense<0.000000e+00> : vector<16x64xf32>
    %223 = tpu.matmul %222, %220, %cst_95 {dimension_numbers = #tpu.dot_dimension_numbers<[1], [0], [0], [1], [0, 0, 1, 1], [], []>} : vector<16x16xf32>, vector<16x64xf32>, vector<16x64xf32> -> vector<16x64xf32>
    %224 = arith.addf %214, %223 : vector<16x64xf32>
    %225 = vector.extract_strided_slice %200 {offsets = [0, 57], sizes = [16, 7], strides = [1, 1]} : vector<16x64xf32> to vector<16x7xf32>
    %226 = vector.extract_strided_slice %200 {offsets = [0, 0], sizes = [16, 57], strides = [1, 1]} : vector<16x64xf32> to vector<16x57xf32>
    %227 = tpu.concatenate %225, %226 in 1 : vector<16x7xf32>, vector<16x57xf32> -> vector<16x64xf32>
    %228 = vector.extract_strided_slice %15 {offsets = [2, 0], sizes = [1, 64], strides = [1, 1]} : vector<9x64xf32> to vector<1x64xf32>
    %229 = vector.broadcast %228 : vector<1x64xf32> to vector<16x64xf32>
    %230 = arith.mulf %227, %229 : vector<16x64xf32>
    %c2_96 = arith.constant 2 : index
    %c0_97 = arith.constant 0 : index
    %c0_98 = arith.constant 0 : index
    %231 = vector.load %arg10[%c2_96, %c0_97, %c0_98] : memref<9x16x16xf32, #tpu.memory_space<vmem>>, vector<1x16x16xf32>
    %232 = vector.shape_cast %231 : vector<1x16x16xf32> to vector<16x16xf32>
    %cst_99 = arith.constant dense<0.000000e+00> : vector<16x64xf32>
    %233 = tpu.matmul %232, %230, %cst_99 {dimension_numbers = #tpu.dot_dimension_numbers<[1], [0], [0], [1], [0, 0, 1, 1], [], []>} : vector<16x16xf32>, vector<16x64xf32>, vector<16x64xf32> -> vector<16x64xf32>
    %234 = arith.addf %224, %233 : vector<16x64xf32>
    %235 = vector.extract_strided_slice %200 {offsets = [0, 63], sizes = [16, 1], strides = [1, 1]} : vector<16x64xf32> to vector<16x1xf32>
    %236 = vector.extract_strided_slice %200 {offsets = [0, 0], sizes = [16, 63], strides = [1, 1]} : vector<16x64xf32> to vector<16x63xf32>
    %237 = tpu.concatenate %235, %236 in 1 : vector<16x1xf32>, vector<16x63xf32> -> vector<16x64xf32>
    %238 = vector.extract_strided_slice %15 {offsets = [3, 0], sizes = [1, 64], strides = [1, 1]} : vector<9x64xf32> to vector<1x64xf32>
    %239 = vector.broadcast %238 : vector<1x64xf32> to vector<16x64xf32>
    %240 = arith.mulf %237, %239 : vector<16x64xf32>
    %c3_100 = arith.constant 3 : index
    %c0_101 = arith.constant 0 : index
    %c0_102 = arith.constant 0 : index
    %241 = vector.load %arg10[%c3_100, %c0_101, %c0_102] : memref<9x16x16xf32, #tpu.memory_space<vmem>>, vector<1x16x16xf32>
    %242 = vector.shape_cast %241 : vector<1x16x16xf32> to vector<16x16xf32>
    %cst_103 = arith.constant dense<0.000000e+00> : vector<16x64xf32>
    %243 = tpu.matmul %242, %240, %cst_103 {dimension_numbers = #tpu.dot_dimension_numbers<[1], [0], [0], [1], [0, 0, 1, 1], [], []>} : vector<16x16xf32>, vector<16x64xf32>, vector<16x64xf32> -> vector<16x64xf32>
    %244 = arith.addf %234, %243 : vector<16x64xf32>
    %245 = vector.extract_strided_slice %15 {offsets = [4, 0], sizes = [1, 64], strides = [1, 1]} : vector<9x64xf32> to vector<1x64xf32>
    %246 = vector.broadcast %245 : vector<1x64xf32> to vector<16x64xf32>
    %247 = arith.mulf %200, %246 : vector<16x64xf32>
    %c4_104 = arith.constant 4 : index
    %c0_105 = arith.constant 0 : index
    %c0_106 = arith.constant 0 : index
    %248 = vector.load %arg10[%c4_104, %c0_105, %c0_106] : memref<9x16x16xf32, #tpu.memory_space<vmem>>, vector<1x16x16xf32>
    %249 = vector.shape_cast %248 : vector<1x16x16xf32> to vector<16x16xf32>
    %cst_107 = arith.constant dense<0.000000e+00> : vector<16x64xf32>
    %250 = tpu.matmul %249, %247, %cst_107 {dimension_numbers = #tpu.dot_dimension_numbers<[1], [0], [0], [1], [0, 0, 1, 1], [], []>} : vector<16x16xf32>, vector<16x64xf32>, vector<16x64xf32> -> vector<16x64xf32>
    %251 = arith.addf %244, %250 : vector<16x64xf32>
    %252 = vector.extract_strided_slice %200 {offsets = [0, 1], sizes = [16, 63], strides = [1, 1]} : vector<16x64xf32> to vector<16x63xf32>
    %253 = vector.extract_strided_slice %200 {offsets = [0, 0], sizes = [16, 1], strides = [1, 1]} : vector<16x64xf32> to vector<16x1xf32>
    %254 = tpu.concatenate %252, %253 in 1 : vector<16x63xf32>, vector<16x1xf32> -> vector<16x64xf32>
    %255 = vector.extract_strided_slice %15 {offsets = [5, 0], sizes = [1, 64], strides = [1, 1]} : vector<9x64xf32> to vector<1x64xf32>
    %256 = vector.broadcast %255 : vector<1x64xf32> to vector<16x64xf32>
    %257 = arith.mulf %254, %256 : vector<16x64xf32>
    %c5_108 = arith.constant 5 : index
    %c0_109 = arith.constant 0 : index
    %c0_110 = arith.constant 0 : index
    %258 = vector.load %arg10[%c5_108, %c0_109, %c0_110] : memref<9x16x16xf32, #tpu.memory_space<vmem>>, vector<1x16x16xf32>
    %259 = vector.shape_cast %258 : vector<1x16x16xf32> to vector<16x16xf32>
    %cst_111 = arith.constant dense<0.000000e+00> : vector<16x64xf32>
    %260 = tpu.matmul %259, %257, %cst_111 {dimension_numbers = #tpu.dot_dimension_numbers<[1], [0], [0], [1], [0, 0, 1, 1], [], []>} : vector<16x16xf32>, vector<16x64xf32>, vector<16x64xf32> -> vector<16x64xf32>
    %261 = arith.addf %251, %260 : vector<16x64xf32>
    %262 = vector.extract_strided_slice %200 {offsets = [0, 7], sizes = [16, 57], strides = [1, 1]} : vector<16x64xf32> to vector<16x57xf32>
    %263 = vector.extract_strided_slice %200 {offsets = [0, 0], sizes = [16, 7], strides = [1, 1]} : vector<16x64xf32> to vector<16x7xf32>
    %264 = tpu.concatenate %262, %263 in 1 : vector<16x57xf32>, vector<16x7xf32> -> vector<16x64xf32>
    %265 = vector.extract_strided_slice %15 {offsets = [6, 0], sizes = [1, 64], strides = [1, 1]} : vector<9x64xf32> to vector<1x64xf32>
    %266 = vector.broadcast %265 : vector<1x64xf32> to vector<16x64xf32>
    %267 = arith.mulf %264, %266 : vector<16x64xf32>
    %c6_112 = arith.constant 6 : index
    %c0_113 = arith.constant 0 : index
    %c0_114 = arith.constant 0 : index
    %268 = vector.load %arg10[%c6_112, %c0_113, %c0_114] : memref<9x16x16xf32, #tpu.memory_space<vmem>>, vector<1x16x16xf32>
    %269 = vector.shape_cast %268 : vector<1x16x16xf32> to vector<16x16xf32>
    %cst_115 = arith.constant dense<0.000000e+00> : vector<16x64xf32>
    %270 = tpu.matmul %269, %267, %cst_115 {dimension_numbers = #tpu.dot_dimension_numbers<[1], [0], [0], [1], [0, 0, 1, 1], [], []>} : vector<16x16xf32>, vector<16x64xf32>, vector<16x64xf32> -> vector<16x64xf32>
    %271 = arith.addf %261, %270 : vector<16x64xf32>
    %272 = vector.extract_strided_slice %200 {offsets = [0, 8], sizes = [16, 56], strides = [1, 1]} : vector<16x64xf32> to vector<16x56xf32>
    %273 = vector.extract_strided_slice %200 {offsets = [0, 0], sizes = [16, 8], strides = [1, 1]} : vector<16x64xf32> to vector<16x8xf32>
    %274 = tpu.concatenate %272, %273 in 1 : vector<16x56xf32>, vector<16x8xf32> -> vector<16x64xf32>
    %275 = vector.extract_strided_slice %15 {offsets = [7, 0], sizes = [1, 64], strides = [1, 1]} : vector<9x64xf32> to vector<1x64xf32>
    %276 = vector.broadcast %275 : vector<1x64xf32> to vector<16x64xf32>
    %277 = arith.mulf %274, %276 : vector<16x64xf32>
    %c7_116 = arith.constant 7 : index
    %c0_117 = arith.constant 0 : index
    %c0_118 = arith.constant 0 : index
    %278 = vector.load %arg10[%c7_116, %c0_117, %c0_118] : memref<9x16x16xf32, #tpu.memory_space<vmem>>, vector<1x16x16xf32>
    %279 = vector.shape_cast %278 : vector<1x16x16xf32> to vector<16x16xf32>
    %cst_119 = arith.constant dense<0.000000e+00> : vector<16x64xf32>
    %280 = tpu.matmul %279, %277, %cst_119 {dimension_numbers = #tpu.dot_dimension_numbers<[1], [0], [0], [1], [0, 0, 1, 1], [], []>} : vector<16x16xf32>, vector<16x64xf32>, vector<16x64xf32> -> vector<16x64xf32>
    %281 = arith.addf %271, %280 : vector<16x64xf32>
    %282 = vector.extract_strided_slice %200 {offsets = [0, 9], sizes = [16, 55], strides = [1, 1]} : vector<16x64xf32> to vector<16x55xf32>
    %283 = vector.extract_strided_slice %200 {offsets = [0, 0], sizes = [16, 9], strides = [1, 1]} : vector<16x64xf32> to vector<16x9xf32>
    %284 = tpu.concatenate %282, %283 in 1 : vector<16x55xf32>, vector<16x9xf32> -> vector<16x64xf32>
    %285 = vector.extract_strided_slice %15 {offsets = [8, 0], sizes = [1, 64], strides = [1, 1]} : vector<9x64xf32> to vector<1x64xf32>
    %286 = vector.broadcast %285 : vector<1x64xf32> to vector<16x64xf32>
    %287 = arith.mulf %284, %286 : vector<16x64xf32>
    %c8_120 = arith.constant 8 : index
    %c0_121 = arith.constant 0 : index
    %c0_122 = arith.constant 0 : index
    %288 = vector.load %arg10[%c8_120, %c0_121, %c0_122] : memref<9x16x16xf32, #tpu.memory_space<vmem>>, vector<1x16x16xf32>
    %289 = vector.shape_cast %288 : vector<1x16x16xf32> to vector<16x16xf32>
    %cst_123 = arith.constant dense<0.000000e+00> : vector<16x64xf32>
    %290 = tpu.matmul %289, %287, %cst_123 {dimension_numbers = #tpu.dot_dimension_numbers<[1], [0], [0], [1], [0, 0, 1, 1], [], []>} : vector<16x16xf32>, vector<16x64xf32>, vector<16x64xf32> -> vector<16x64xf32>
    %291 = arith.addf %281, %290 : vector<16x64xf32>
    %292 = arith.addf %291, %107 : vector<16x64xf32>
    %c0_124 = arith.constant 0 : index
    %c0_125 = arith.constant 0 : index
    %293 = vector.load %arg13[%c0_124, %c0_125] : memref<16x16xf32, #tpu.memory_space<vmem>>, vector<16x16xf32>
    %cst_126 = arith.constant dense<0.000000e+00> : vector<16x64xf32>
    %294 = tpu.matmul %293, %292, %cst_126 {dimension_numbers = #tpu.dot_dimension_numbers<[1], [0], [0], [1], [0, 0, 1, 1], [], []>} : vector<16x16xf32>, vector<16x64xf32>, vector<16x64xf32> -> vector<16x64xf32>
    %c0_127 = arith.constant 0 : index
    %c0_128 = arith.constant 0 : index
    %295 = vector.load %arg14[%c0_127, %c0_128] : memref<16x16xf32, #tpu.memory_space<vmem>>, vector<16x16xf32>
    %cst_129 = arith.constant dense<0.000000e+00> : vector<16x64xf32>
    %296 = tpu.matmul %295, %292, %cst_129 {dimension_numbers = #tpu.dot_dimension_numbers<[1], [0], [0], [1], [0, 0, 1, 1], [], []>} : vector<16x16xf32>, vector<16x64xf32>, vector<16x64xf32> -> vector<16x64xf32>
    %cst_130 = arith.constant dense<0.000000e+00> : vector<64x64xf32>
    %297 = tpu.matmul %294, %292, %cst_130 {dimension_numbers = #tpu.dot_dimension_numbers<[0], [0], [1], [1], [0, 1, 1, 1], [], []>} : vector<16x64xf32>, vector<16x64xf32>, vector<64x64xf32> -> vector<64x64xf32>
    %cst_131 = arith.constant dense<0xFF800000> : vector<64xf32>
    %298 = vector.multi_reduction <maximumf>, %297, %cst_131 [1] : vector<64x64xf32> to vector<64xf32>
    %299 = vector.shape_cast %298 : vector<64xf32> to vector<64x1xf32>
    %300 = vector.broadcast %299 : vector<64x1xf32> to vector<64x64xf32>
    %301 = arith.subf %297, %300 : vector<64x64xf32>
    %302 = math.exp %301 : vector<64x64xf32>
    %cst_132 = arith.constant dense<0.000000e+00> : vector<64xf32>
    %303 = vector.multi_reduction <add>, %302, %cst_132 [1] : vector<64x64xf32> to vector<64xf32>
    %304 = vector.shape_cast %303 : vector<64xf32> to vector<64x1xf32>
    %305 = vector.broadcast %304 : vector<64x1xf32> to vector<64x64xf32>
    %306 = arith.divf %302, %305 : vector<64x64xf32>
    %cst_133 = arith.constant dense<0.000000e+00> : vector<16x64xf32>
    %307 = tpu.matmul %296, %306, %cst_133 {dimension_numbers = #tpu.dot_dimension_numbers<[1], [1], [0], [0], [0, 0, 1, 0], [], []>} : vector<16x64xf32>, vector<64x64xf32>, vector<16x64xf32> -> vector<16x64xf32>
    %308 = arith.addf %307, %292 : vector<16x64xf32>
    %c0_134 = arith.constant 0 : index
    %c0_135 = arith.constant 0 : index
    %c0_136 = arith.constant 0 : index
    %309 = vector.load %arg15[%c0_134, %c0_135, %c0_136] : memref<1x16x64xf32, #tpu.memory_space<vmem>>, vector<1x16x64xf32>
    %310 = vector.shape_cast %309 : vector<1x16x64xf32> to vector<16x64xf32>
    %311 = vector.shape_cast %308 : vector<16x64xf32> to vector<1x16x64xf32>
    tpu.vector_store %arg15[%c0_134, %c0_135, %c0_136], %311 {strides = array<i32>} : memref<1x16x64xf32, #tpu.memory_space<vmem>>, vector<1x16x64xf32>,
    return
  }
  func.func @transform_0(%arg0: i32) -> (i32, i32, i32) {
    %c0_i32 = arith.constant 0 : i32
    %c0_i32_0 = arith.constant 0 : i32
    %c0_i32_1 = arith.constant 0 : i32
    return %arg0, %c0_i32, %c0_i32_0 : i32, i32, i32
  }
  func.func @transform_1(%arg0: i32) -> (i32, i32) {
    %c0_i32 = arith.constant 0 : i32
    %c0_i32_0 = arith.constant 0 : i32
    %c0_i32_1 = arith.constant 0 : i32
    return %c0_i32, %c0_i32_0 : i32, i32
  }
  func.func @transform_2(%arg0: i32) -> (i32, i32) {
    %c0_i32 = arith.constant 0 : i32
    %c0_i32_0 = arith.constant 0 : i32
    %c0_i32_1 = arith.constant 0 : i32
    return %c0_i32, %c0_i32_0 : i32, i32
  }
  func.func @transform_3(%arg0: i32) -> (i32, i32) {
    %c0_i32 = arith.constant 0 : i32
    %c0_i32_0 = arith.constant 0 : i32
    %c0_i32_1 = arith.constant 0 : i32
    return %c0_i32, %c0_i32_0 : i32, i32
  }
  func.func @transform_4(%arg0: i32) -> (i32, i32) {
    %c0_i32 = arith.constant 0 : i32
    %c0_i32_0 = arith.constant 0 : i32
    %c0_i32_1 = arith.constant 0 : i32
    return %c0_i32, %c0_i32_0 : i32, i32
  }
  func.func @transform_5(%arg0: i32) -> (i32, i32, i32) {
    %c0_i32 = arith.constant 0 : i32
    %c0_i32_0 = arith.constant 0 : i32
    %c0_i32_1 = arith.constant 0 : i32
    %c0_i32_2 = arith.constant 0 : i32
    return %c0_i32, %c0_i32_0, %c0_i32_1 : i32, i32, i32
  }
  func.func @transform_6(%arg0: i32) -> (i32, i32) {
    %c0_i32 = arith.constant 0 : i32
    %c0_i32_0 = arith.constant 0 : i32
    %c0_i32_1 = arith.constant 0 : i32
    return %c0_i32, %c0_i32_0 : i32, i32
  }
  func.func @transform_7(%arg0: i32) -> (i32, i32, i32) {
    %c0_i32 = arith.constant 0 : i32
    %c0_i32_0 = arith.constant 0 : i32
    %c0_i32_1 = arith.constant 0 : i32
    %c0_i32_2 = arith.constant 0 : i32
    return %c0_i32, %c0_i32_0, %c0_i32_1 : i32, i32, i32
  }
  func.func @transform_8(%arg0: i32) -> (i32, i32) {
    %c0_i32 = arith.constant 0 : i32
    %c0_i32_0 = arith.constant 0 : i32
    %c0_i32_1 = arith.constant 0 : i32
    return %c0_i32, %c0_i32_0 : i32, i32
  }
  func.func @transform_9(%arg0: i32) -> (i32, i32, i32) {
    %c0_i32 = arith.constant 0 : i32
    %c0_i32_0 = arith.constant 0 : i32
    %c0_i32_1 = arith.constant 0 : i32
    %c0_i32_2 = arith.constant 0 : i32
    return %c0_i32, %c0_i32_0, %c0_i32_1 : i32, i32, i32
  }
  func.func @transform_10(%arg0: i32) -> (i32, i32) {
    %c0_i32 = arith.constant 0 : i32
    %c0_i32_0 = arith.constant 0 : i32
    %c0_i32_1 = arith.constant 0 : i32
    return %c0_i32, %c0_i32_0 : i32, i32
  }
  func.func @transform_11(%arg0: i32) -> (i32, i32) {
    %c0_i32 = arith.constant 0 : i32
    %c0_i32_0 = arith.constant 0 : i32
    %c0_i32_1 = arith.constant 0 : i32
    return %c0_i32, %c0_i32_0 : i32, i32
  }
  func.func @transform_12(%arg0: i32) -> (i32, i32) {
    %c0_i32 = arith.constant 0 : i32
    %c0_i32_0 = arith.constant 0 : i32
    %c0_i32_1 = arith.constant 0 : i32
    return %c0_i32, %c0_i32_0 : i32, i32
  }
  func.func @transform_13(%arg0: i32) -> (i32, i32) {
    %c0_i32 = arith.constant 0 : i32
    %c0_i32_0 = arith.constant 0 : i32
    %c0_i32_1 = arith.constant 0 : i32
    return %c0_i32, %c0_i32_0 : i32, i32
  }
  func.func @transform_14(%arg0: i32) -> (i32, i32, i32) {
    %c0_i32 = arith.constant 0 : i32
    %c0_i32_0 = arith.constant 0 : i32
    %c0_i32_1 = arith.constant 0 : i32
    return %arg0, %c0_i32, %c0_i32_0 : i32, i32, i32
  }
}

</mosaic_0001>

<bundles_post_ra>
// kernel: forward.1
= control target key start
LH: loop header
LB: loop body
LE: loop exit
PB: predicated region body
PF: predicated region fallthrough
CT: control target
= control target key end

     0   :  { %s4773_s29 = smov 0   ;;  %s5538_s0 = inlined_call_operand.vmem [shape: f32[2,72,64], index: 0, kind: input, shape index: {}]   ;;  %s5539_s1 = inlined_call_operand.vmem [shape: f32[16,72], index: 1, kind: input, shape index: {}]   ;;  %s5540_s2 = inlined_call_operand.vmem [shape: f32[16,1], index: 2, kind: input, shape index: {}]   ;;  %s5541_s3 = inlined_call_operand.vmem [shape: f32[16,8], index: 3, kind: input, shape index: {}]   ;;  %s5542_s4 = inlined_call_operand.vmem [shape: f32[16,1], index: 4, kind: input, shape index: {}]   ;;  %s5543_s5 = inlined_call_operand.vmem [shape: f32[9,16,16], index: 5, kind: input, shape index: {}]   ;;  %s5544_s6 = inlined_call_operand.vmem [shape: f32[16,1], index: 6, kind: input, shape index: {}]   ;;  %s5545_s7 = inlined_call_operand.vmem [shape: f32[9,16,16], index: 7, kind: input, shape index: {}]   ;;  %s5546_s8 = inlined_call_operand.vmem [shape: f32[16,1], index: 8, kind: input, shape index: {}]   ;;  %s5547_s9 = inlined_call_operand.vmem [shape: f32[9,16,16], index: 9, kind: input, shape index: {}]   ;;  %s5548_s10 = inlined_call_operand.vmem [shape: f32[16,1], index: 10, kind: input, shape index: {}]   ;;  %s5549_s11 = inlined_call_operand.vmem [shape: f32[9,64], index: 11, kind: input, shape index: {}]   ;;  %s5550_s12 = inlined_call_operand.vmem [shape: f32[16,16], index: 12, kind: input, shape index: {}]   ;;  %s5551_s13 = inlined_call_operand.vmem [shape: f32[16,16], index: 13, kind: input, shape index: {}]   ;;  %s5552_s14 = inlined_call_operand.vmem [shape: f32[2,16,64], index: 14, kind: output, shape index: {}]  }
   0x1   :  { %5585 = sst [smem:[#allocation2_spill]] %s5538_s0 }
   0x2   :  { %5586 = sst [smem:[#allocation3_spill]] %s5539_s1 }
   0x3   :  { %5587 = sst [smem:[#allocation4_spill]] %s5540_s2 }
   0x4   :  { %5588 = sst [smem:[#allocation5_spill]] %s5541_s3 }
   0x5   :  { %5589 = sst [smem:[#allocation6_spill]] %s5542_s4 }
   0x6   :  { %5590 = sst [smem:[#allocation7_spill]] %s5543_s5 }
   0x7   :  { %5591 = sst [smem:[#allocation8_spill]] %s5544_s6 }
   0x8   :  { %5592 = sst [smem:[#allocation9_spill]] %s5546_s8 }
   0x9 LB: > { %s4058_s30 = sadd.s32 4294967295, %s4679_s29   ;;  %p4062_p0 = scmp.ge.s32.totalorder %s4679_s29, 1  ;;  %s4679_s29 = sphi %s4773_s29, %s24_s29  }
   0xa   : > { %p412_p1 = scmp.lt.s32.totalorder %s4679_s29, 3 }
   0xc   : > { %p413_p2 = pnand %p4062_p0, %p412_p1 }
   0xd   : > { %p458_p3 = scmp.lt.s32.totalorder (!%p413_p2), %s4058_s30, 1  ;;  %s5593_s1 = sld [smem:[#allocation3_spill]] (!%p413_p2) }
   0xe   : > { %416 = sbr.rel (%p413_p2) target bundleno = 2461 (0x99d), region = 76  ;;  %s5594_s2 = sld [smem:[#allocation4_spill]] (!%p413_p2) }
   0xf   : > { %s5595_s3 = sld [smem:[#allocation5_spill]] (!%p413_p2)  ;;  %s5563_s17 = smov (!%p413_p2), 72  }
  0x10   : > { %s5596_s0 = sld [smem:[#allocation2_spill]] (!%p413_p2)  ;;  %s5575_s18 = smov (!%p413_p2), 73  }
  0x11   : > { %s5557_s19 = smov (!%p413_p2), 71   ;;  %s5577_s20 = smov (!%p413_p2), 9  }
  0x12   : > { %s5559_s21 = smov (!%p413_p2), 65   ;;  %s5571_s22 = smov (!%p413_p2), 8  }
  0x13   : > { %v477_v0 = vld [vmem:[%s5593_s1] sm:$0xff]  ;;  %vm491_vm0 = vcmask 588800   ;;  %v4681_v2 = vmov 0   ;;  %vm589_vm1 = vcmask 64512   ;;  %s5618_s30 = smov (!%p458_p3, %s4058_s30), 1  ;;  %v478_v14 = vld [vmem:[%s5593_s1 + $0x8] sm:$0xff]  ;;  %v704_v30 = vlaneseq }
  0x14   : > { %v480_v1 = vld [vmem:[%s5594_s2 + $0x8] sm:$0xff]  ;;  %4366 = vmatprep.mubr.msk.f32.mxu0 %vm491_vm0, %v477_v0  ;;  %4639 = vset.pattern.permute.xlu0 %v4681_v2  ;;  %v479_v4 = vld [vmem:[%s5594_s2] sm:$0xff]  ;;  %s4612_s23 = smul.u32 72, %s5618_s30  ;;  %s5561_s24 = smov 7   ;;  %vm712_vm2 = vcmask 130048   ;;  %vm701_vm3 = vcmask 72704  }
  0x15   : > { %v575_v3 = vld [vmem:[%s5595_s3] sm:$0xff]  ;;  %488 = vperm.xlu0 %4639, %v480_v1   ;;  %4640 = vset.pattern.permute.xlu1 %v4681_v2  ;;  %v576_v15 = vld [vmem:[%s5595_s3 + $0x8] sm:$0xff]  ;;  %s5553_s25 = smov 121   ;;  %s5555_s27 = smov 120   ;;  %v4897_v31 = vshrl.u32 %v704_v30, 7  ;;  %vm914_vm4 = vcmask 56320  }
  0x16   : > { %4371 = vmatprep.mubr.msk.f32.mxu1 %vm589_vm1, %v575_v3  ;;  %s462_s26 = scalar_lea.vmem %s5596_s0, %s4612_s23  ;;  %s5565_s23 = smov 127   ;;  %v4903_v35 = vld [vmem:[%s5549_s11] sm:$0xff]  ;;  %vm1021_vm5 = vcmask 7168   ;;  %vm1220_vm6 = vcmask 515072   ;;  %vm1541_vm7 = vcmask 449536   ;;  %vm1327_vm8 = vcmask 465920  }
  0x17   : > { %v476_v5 = vld [vmem:[%s462_s26 + $0x40] sm:$0xff]  ;;  %v475_v6 = vld [vmem:[%s462_s26 + $0x38] sm:$0xff]  ;;  %v474_v8 = vld [vmem:[%s462_s26 + $0x30] sm:$0xff]  ;;  %s5569_s28 = smov 63   ;;  %s5597_s5 = sld [smem:[#allocation7_spill]]  ;;  %v706_v32 = vsub.s32 0, %v4897_v31 }
  0x18   : > { %4348 = vmatprep.subr.mxu0 %v476_v5  ;;  %v472_v7 = vld [vmem:[%s462_s26 + $0x20] sm:$0xff]  ;;  %v473_v9 = vld [vmem:[%s462_s26 + $0x28] sm:$0xff]  ;;  %v471_v10 = vld [vmem:[%s462_s26 + $0x18] sm:$0xff]  ;;  %s5573_s15 = smov 119   ;;  %s5579_s16 = smov 55   ;;  %v812_v51 = vsub.s32 1, %v4897_v31 }
  0x19   : > { %483 = vperm.xlu0 %4639, %v479_v4   ;;  %4349 = vmatpush3.msra.mxu0 %v476_v5  ;;  %v470_v11 = vld [vmem:[%s462_s26 + $0x10] sm:$0xff]  ;;  %v469_v12 = vld [vmem:[%s462_s26 + $0x8] sm:$0xff]  ;;  %v468_v13 = vld [vmem:[%s462_s26] sm:$0xff]  ;;  %s5567_s26 = smov 1   ;;  %s5600_s6 = sld [smem:[#allocation8_spill]]  ;;  %v4906_v36 = vrot.slane %v4903_v35, %v706_v32  ;;  %v919_v55 = vsub.s32 2, %v4897_v31 }
  0x1a   : > { %4369 = vmatprep.subr.mxu1 %v472_v7  ;;  %4350 = vmatprep.subr.mxu0 %v475_v6  ;;  %s5601_s4 = sld [smem:[#allocation6_spill]]  ;;  %v4924_v54 = vrot.slane %v4903_v35, %v812_v51  ;;  %v1026_v0 = vsub.s32 3, %v4897_v31  ;;  %v1332_v32 = vsub.s32 6, %v4897_v31  ;;  %vm1434_vm9 = vcmask 457728   ;;  %s5613_s1 = smov 73  }
  0x1b   : > { %4370 = vmatpush3.msra.mxu1 %v472_v7  ;;  %4351 = vmatpush3.msra.mxu0 %v475_v6  ;;  %v4935_v63 = vrot.slane %v4903_v35, %v919_v55  ;;  %s5614_s0 = smov 57   ;;  %s5616_s8 = sld [smem:[#allocation9_spill]]  ;;  %vm3807_vm10 = vcmask 523264  }
  0x1c   : > { %4352 = vmatprep.subr.mxu0 %v474_v8  ;;  %4372 = vmatmul.mubr.msk.f32.vlgmr.msra.gmra.mxu1 %vm589_vm1, %v576_v15 }
  0x1d   : > { %4353 = vmatpush3.msra.mxu0 %v474_v8  ;;  %v710_v24 = vld [vmem:[%s5597_s5] sm:$0xff]  ;;  %v711_v61 = vld [vmem:[%s5597_s5 + $0x8] sm:$0xff]  ;;  %v4072_v3 = vld [vmem:[%s5597_s5 + $0x10] sm:$0xff] }
  0x1e   : > { %4354 = vmatprep.subr.mxu0 %v473_v9  ;;  %4378 = vmatprep.mubr.msk.f32.mxu1 %vm712_vm2, %v710_v24  ;;  %v4101_v25 = vld [vmem:[%s5597_s5 + $0x80] sm:$0xff] }
  0x1f   : > { %4355 = vmatpush3.msra.mxu0 %v473_v9  ;;  %v674_v26 = vld [vmem:[%s5600_s6 + $0x8] sm:$0xff]  ;;  %v673_v28 = vld [vmem:[%s5600_s6] sm:$0xff]  ;;  %v4951_v9 = vrot.slane %v4903_v35, %v1026_v0 }
  0x20   : > { %4356 = vmatprep.subr.mxu0 %v472_v7  ;;  %v578_v27 = vld [vmem:[%s5601_s4 + $0x8] sm:$0xff]  ;;  %v577_v29 = vld [vmem:[%s5601_s4] sm:$0xff] }
  0x21   : > { %4357 = vmatpush3.msra.mxu0 %v472_v7  ;;  %v4073_v7 = vld [vmem:[%s5597_s5 + $0x18] sm:$0xff] }
  0x22   : > { %4358 = vmatprep.subr.mxu0 %v471_v10 }
  0x23   : > { %4359 = vmatpush3.msra.mxu0 %v471_v10 }
  0x24   : > { %4360 = vmatprep.subr.mxu0 %v470_v11 }
  0x25   : > { %4361 = vmatpush3.msra.mxu0 %v470_v11 }
  0x26   : > { %4362 = vmatprep.subr.mxu0 %v469_v12 }
  0x27   : > { %4363 = vmatpush3.msra.mxu0 %v469_v12  ;;  %v4076_v12 = vld [vmem:[%s5597_s5 + $0x20] sm:$0xff] }
  0x28   : > { %4364 = vmatprep.subr.mxu0 %v468_v13 }
  0x29   : > { %4365 = vmatpush3.msra.mxu0 %v468_v13  ;;  %v1118_v13 = vsub.s32 4, %v4897_v31 }
  0x2a   : > { %4367 = vmatmul.mubr.msk.f32.vlgmr.msra.gmra.mxu0 %vm491_vm0, %v478_v14 }
  0x2b   : > { %4434 = vmatprep.mubr.msk.f32.mxu0 %vm712_vm2, %v4101_v25  ;;  %v4971_v24 = vrot.slane %v4903_v35, %v1118_v13 }
  0x90   : > { %v489_v16 = vpop.permute.xlu0 %488 }
  0x94   : > { %v484_v21 = vpop.permute.xlu0 %483 }
  0xea   : > { %v4368_v17 = vpop.f32.mrf.mxu0 }
  0xeb   : > { %v570_v18 = vadd.f32 %v4368_v17, %v489_v16  ;;  %v4077_v17 = vld [vmem:[%s5597_s5 + $0x28] sm:$0xff] }
  0xec   : > { %v564_v20 = vpop.f32.mrf.mxu0 }
  0xed   : > { %v4809_v19 = vmax.f32 %v570_v18, 0.0  ;;  %v565_v22 = vadd.f32 %v564_v20, %v484_v21  ;;  %v1225_v20 = vsub.s32 5, %v4897_v31 }
  0xef   : > { %798 = vrot.lane.b32.xlu0 %v4809_v19, %s5563_s17  ;;  %691 = vrot.lane.b32.xlu1 %v4809_v19, %s5575_s18  ;;  %v4835_v23 = vmax.f32 %v565_v22, 0.0  ;;  %v4080_v22 = vld [vmem:[%s5597_s5 + $0x30] sm:$0xff]  ;;  %v4986_v30 = vrot.slane %v4903_v35, %v1225_v20 }
  0xf3   : > { %904 = vrot.lane.b32.xlu0 %v4809_v19, %s5557_s19  ;;  %697 = vrot.lane.b32.xlu1 %v4809_v19, %s5577_s20 }
  0xf7   : > { %1011 = vrot.lane.b32.xlu0 %v4809_v19, %s5559_s21  ;;  %804 = vrot.lane.b32.xlu1 %v4809_v19, %s5571_s22 }
  0xfb   : > { %1210 = vrot.lane.b32.xlu0 %v4809_v19, %s5565_s23  ;;  %910 = vrot.lane.b32.xlu1 %v4809_v19, %s5561_s24 }
  0xff   : > { %1317 = vrot.lane.b32.xlu0 %v4809_v19, %s5553_s25  ;;  %1017 = vrot.lane.b32.xlu1 %v4809_v19, %s5567_s26  ;;  %s5581_s25 = smov 57  }
 0x103   : > { %1424 = vrot.lane.b32.xlu0 %v4809_v19, %s5555_s27  ;;  %1216 = vrot.lane.b32.xlu1 %v4809_v19, %s5569_s28  ;;  %s5583_s27 = smov 56  }
 0x107   : > { %1323 = vrot.lane.b32.xlu1 %v4809_v19, %s5581_s25  ;;  %689 = vrot.lane.b32.xlu0 %v4835_v23, %s5575_s18 }
 0x10b   : > { %1430 = vrot.lane.b32.xlu1 %v4809_v19, %s5583_s27  ;;  %796 = vrot.lane.b32.xlu0 %v4835_v23, %s5563_s17  ;;  %s5605_s17 = smov 71  }
 0x10f   : > { %695 = vrot.lane.b32.xlu1 %v4835_v23, %s5577_s20  ;;  %902 = vrot.lane.b32.xlu0 %v4835_v23, %s5557_s19  ;;  %s5598_s19 = smov 121  }
 0x113   : > { %802 = vrot.lane.b32.xlu1 %v4835_v23, %s5571_s22  ;;  %1009 = vrot.lane.b32.xlu0 %v4835_v23, %s5559_s21  ;;  %s5599_s21 = smov 120   ;;  %s5608_s22 = smov 63  }
 0x117   : > { %908 = vrot.lane.b32.xlu1 %v4835_v23, %s5561_s24  ;;  %1531 = vrot.lane.b32.xlu0 %v4809_v19, %s5573_s15  ;;  %s5606_s24 = smov 1  }
 0x11b   : > { %1015 = vrot.lane.b32.xlu1 %v4835_v23, %s5567_s26  ;;  %1208 = vrot.lane.b32.xlu0 %v4835_v23, %s5565_s23  ;;  %s5602_s26 = smov 8   ;;  %s5607_s23 = smov 65  }
 0x11f   : > { %1537 = vrot.lane.b32.xlu1 %v4809_v19, %s5579_s16  ;;  %1315 = vrot.lane.b32.xlu0 %v4835_v23, %s5598_s19 }
 0x123   : > { %1214 = vrot.lane.b32.xlu1 %v4835_v23, %s5569_s28  ;;  %1422 = vrot.lane.b32.xlu0 %v4835_v23, %s5599_s21  ;;  %s5603_s28 = smov 72  }
 0x127   : > { %1321 = vrot.lane.b32.xlu1 %v4835_v23, %s5581_s25  ;;  %1529 = vrot.lane.b32.xlu0 %v4835_v23, %s5573_s15  ;;  %s5604_s15 = smov 7  }
 0x12b   : > { %1428 = vrot.lane.b32.xlu1 %v4835_v23, %s5583_s27  ;;  %682 = vperm.xlu0 %4639, %v674_v26  }
 0x12f   : > { %1535 = vrot.lane.b32.xlu1 %v4835_v23, %s5579_s16  ;;  %586 = vperm.xlu0 %4639, %v578_v27   ;;  %s5611_s16 = smov 119  }
 0x133   : > { %677 = vperm.xlu1 %4640, %v673_v28   ;;  %v4979_v28 = vld [vmem:[%s5549_s11 + $0x8] ss:$0 sm:$0xff] }
 0x137   : > { %581 = vperm.xlu1 %4640, %v577_v29   ;;  %v4081_v29 = vld [vmem:[%s5597_s5 + $0x38] sm:$0xff] }
 0x161   : > { %v799_v33 = vpop.permute.xlu0 %798  ;;  %v692_v34 = vpop.permute.xlu1 %691 }
 0x165   : > { %v905_v37 = vpop.permute.xlu0 %904  ;;  %v698_v38 = vpop.permute.xlu1 %697 }
 0x166   : > { %v703_v39 = vsel %vm701_vm3, %v692_v34, %v698_v38  ;;  %v1121_v34 = vmul.f32 %v4971_v24, %v4809_v19  ;;  %v1120_v19 = vmul.f32 %v4971_v24, %v4835_v23  ;;  %v4088_v23 = vld [vmem:[%s5597_s5 + $0x50] sm:$0xff] }
 0x167   : > { %v709_v40 = vmul.f32 %v4906_v36, %v703_v39 }
 0x169   : > { %v1012_v41 = vpop.permute.xlu0 %1011  ;;  %4374 = vmatprep.subr.mxu1 %v709_v40  ;;  %v805_v42 = vpop.permute.xlu1 %804 }
 0x16a   : > { %4375 = vmatpush3.msra.mxu1 %v709_v40  ;;  %v809_v58 = vsel %vm589_vm1, %v799_v33, %v805_v42 }
 0x16b   : > { %v815_v62 = vmul.f32 %v4924_v54, %v809_v58 }
 0x16d   : > { %v4910_v43 = vpop.permute.xlu0 %1210  ;;  %v911_v44 = vpop.permute.xlu1 %910 }
 0x16e   : > { %v916_v4 = vsel %vm914_vm4, %v905_v37, %v911_v44  ;;  %v4084_v37 = vld [vmem:[%s5597_s5 + $0x40] sm:$0xff]  ;;  %v1439_v44 = vsub.s32 7, %v4897_v31  ;;  %v4089_v31 = vld [vmem:[%s5597_s5 + $0x58] sm:$0xff] }
 0x16f   : > { %v922_v8 = vmul.f32 %v4935_v63, %v916_v4 }
 0x171   : > { %v4912_v45 = vpop.permute.xlu0 %1317  ;;  %v1018_v46 = vpop.permute.xlu1 %1017 }
 0x172   : > { %v1023_v14 = vsel %vm1021_vm5, %v1012_v41, %v1018_v46  ;;  %v4085_v41 = vld [vmem:[%s5597_s5 + $0x48] sm:$0xff] }
 0x173   : > { %v1029_v18 = vmul.f32 %v4951_v9, %v1023_v14 }
 0x175   : > { %v4914_v47 = vpop.permute.xlu0 %1424  ;;  %v4916_v48 = vpop.permute.xlu1 %1216 }
 0x176   : > { %v1222_v38 = vsel %vm1220_vm6, %v4910_v43, %v4916_v48  ;;  %v5008_v43 = vrot.slane %v4903_v35, %v1332_v32 }
 0x177   : > { %v1228_v42 = vmul.f32 %v4986_v30, %v1222_v38 }
 0x179   : > { %v4918_v49 = vpop.permute.xlu1 %1323  ;;  %v690_v50 = vpop.permute.xlu0 %689 }
 0x17d   : > { %v4921_v52 = vpop.permute.xlu1 %1430  ;;  %v797_v53 = vpop.permute.xlu0 %796 }
 0x181   : > { %v696_v56 = vpop.permute.xlu1 %695  ;;  %v903_v57 = vpop.permute.xlu0 %902 }
 0x182   : > { %v702_v59 = vsel %vm701_vm3, %v690_v50, %v696_v56  ;;  %v1329_v50 = vsel %vm1327_vm8, %v4912_v45, %v4918_v49  ;;  %v5026_v45 = vrot.slane %v4903_v35, %v1439_v44  ;;  %v4092_v56 = vld [vmem:[%s5597_s5 + $0x60] sm:$0xff]  ;;  %v4093_v35 = vld [vmem:[%s5597_s5 + $0x68] sm:$0xff] }
 0x183   : > { %v708_v60 = vmul.f32 %v4906_v36, %v702_v59  ;;  %v1335_v55 = vmul.f32 %v5008_v43, %v1329_v50 }
 0x185   : > { %v803_v1 = vpop.permute.xlu1 %802  ;;  %4376 = vmatprep.subr.mxu1 %v708_v60  ;;  %v1010_v2 = vpop.permute.xlu0 %1009 }
 0x186   : > { %v808_v5 = vsel %vm589_vm1, %v797_v53, %v803_v1  ;;  %4377 = vmatpush3.msra.mxu1 %v708_v60  ;;  %v4097_v1 = vld [vmem:[%s5597_s5 + $0x78] sm:$0xff] }
 0x187   : > { %v814_v6 = vmul.f32 %v4924_v54, %v808_v5  ;;  %4379 = vmatmul.mubr.msk.f32.vlgmr.msra.gmra.mxu1 %vm712_vm2, %v711_v61  ;;  %4381 = vmatprep.subr.mxu1 %v815_v62 }
 0x188   : > { %4382 = vmatpush3.msra.mxu1 %v815_v62  ;;  %4385 = vmatprep.mubr.msk.f32.mxu1 %vm712_vm2, %v4072_v3 }
 0x189   : > { %v909_v10 = vpop.permute.xlu1 %908  ;;  %4383 = vmatprep.subr.mxu1 %v814_v6  ;;  %v1532_v11 = vpop.permute.xlu0 %1531 }
 0x18a   : > { %v915_v15 = vsel %vm914_vm4, %v903_v57, %v909_v10  ;;  %4384 = vmatpush3.msra.mxu1 %v814_v6  ;;  %v1436_v57 = vsel %vm1434_vm9, %v4914_v47, %v4921_v52  ;;  %v4096_v47 = vld [vmem:[%s5597_s5 + $0x70] sm:$0xff]  ;;  %v4102_v6 = vld [vmem:[%s5597_s5 + $0x88] sm:$0xff] }
 0x18b   : > { %v921_v16 = vmul.f32 %v4935_v63, %v915_v15  ;;  %4386 = vmatmul.mubr.msk.f32.vlgmr.msra.gmra.mxu1 %vm712_vm2, %v4073_v7  ;;  %4388 = vmatprep.subr.mxu1 %v922_v8  ;;  %v1442_v61 = vmul.f32 %v5026_v45, %v1436_v57  ;;  %v4373_v7 = vpop.f32.mrf.mxu1 }
 0x18c   : > { %4389 = vmatpush3.msra.mxu1 %v922_v8  ;;  %4392 = vmatprep.mubr.msk.f32.mxu1 %vm712_vm2, %v4076_v12 }
 0x18d   : > { %v1016_v21 = vpop.permute.xlu1 %1015  ;;  %4390 = vmatprep.subr.mxu1 %v921_v16  ;;  %v1209_v27 = vpop.permute.xlu0 %1208 }
 0x18e   : > { %v1022_v25 = vsel %vm1021_vm5, %v1010_v2, %v1016_v21  ;;  %4391 = vmatpush3.msra.mxu1 %v921_v16  ;;  %v662_v8 = vpop.f32.mrf.mxu1 }
 0x18f   : > { %v1028_v26 = vmul.f32 %v4951_v9, %v1022_v25  ;;  %4393 = vmatmul.mubr.msk.f32.vlgmr.msra.gmra.mxu1 %vm712_vm2, %v4077_v17  ;;  %4395 = vmatprep.subr.mxu1 %v1029_v18 }
 0x190   : > { %4396 = vmatpush3.msra.mxu1 %v1029_v18  ;;  %4399 = vmatprep.mubr.msk.f32.mxu1 %vm712_vm2, %v4080_v22 }
 0x191   : > { %v1538_v33 = vpop.permute.xlu1 %1537  ;;  %4397 = vmatprep.subr.mxu1 %v1028_v26  ;;  %v1316_v46 = vpop.permute.xlu0 %1315 }
 0x192   : > { %v1543_v39 = vsel %vm1541_vm7, %v1532_v11, %v1538_v33  ;;  %4398 = vmatpush3.msra.mxu1 %v1028_v26 }
 0x193   : > { %v1549_v40 = vmul.f32 %v4979_v28, %v1543_v39  ;;  %4400 = vmatmul.mubr.msk.f32.vlgmr.msra.gmra.mxu1 %vm712_vm2, %v4081_v29  ;;  %4402 = vmatprep.subr.mxu1 %v1121_v34 }
 0x194   : > { %4403 = vmatpush3.msra.mxu1 %v1121_v34  ;;  %4406 = vmatprep.mubr.msk.f32.mxu1 %vm712_vm2, %v4084_v37 }
 0x195   : > { %v1215_v48 = vpop.permute.xlu1 %1214  ;;  %4430 = vmatprep.subr.mxu0 %v1549_v40  ;;  %4404 = vmatprep.subr.mxu1 %v1120_v19  ;;  %v1423_v59 = vpop.permute.xlu0 %1422 }
 0x196   : > { %v1221_v51 = vsel %vm1220_vm6, %v1209_v27, %v1215_v48  ;;  %4405 = vmatpush3.msra.mxu1 %v1120_v19  ;;  %4431 = vmatpush3.msra.mxu0 %v1549_v40 }
 0x197   : > { %v1227_v53 = vmul.f32 %v4986_v30, %v1221_v51  ;;  %4407 = vmatmul.mubr.msk.f32.vlgmr.msra.gmra.mxu1 %vm712_vm2, %v4085_v41  ;;  %4409 = vmatprep.subr.mxu1 %v1228_v42 }
 0x198   : > { %4410 = vmatpush3.msra.mxu1 %v1228_v42  ;;  %4413 = vmatprep.mubr.msk.f32.mxu1 %vm712_vm2, %v4088_v23 }
 0x199   : > { %v1322_v49 = vpop.permute.xlu1 %1321  ;;  %4411 = vmatprep.subr.mxu1 %v1227_v53  ;;  %v1530_v2 = vpop.permute.xlu0 %1529 }
 0x19a   : > { %v1328_v58 = vsel %vm1327_vm8, %v1316_v46, %v1322_v49  ;;  %4412 = vmatpush3.msra.mxu1 %v1227_v53 }
 0x19b   : > { %v1334_v60 = vmul.f32 %v5008_v43, %v1328_v58  ;;  %4414 = vmatmul.mubr.msk.f32.vlgmr.msra.gmra.mxu1 %vm712_vm2, %v4089_v31  ;;  %4416 = vmatprep.subr.mxu1 %v1335_v55  ;;  %v1670_v58 = vld [vmem:[%s5545_s7] sm:$0xff] }
 0x19c   : > { %4417 = vmatpush3.msra.mxu1 %v1335_v55  ;;  %4420 = vmatprep.mubr.msk.f32.mxu1 %vm712_vm2, %v4092_v56 }
 0x19d   : > { %v1429_v62 = vpop.permute.xlu1 %1428  ;;  %4418 = vmatprep.subr.mxu1 %v1334_v60 }
 0x19e   : > { %v1435_v52 = vsel %vm1434_vm9, %v1423_v59, %v1429_v62  ;;  %4419 = vmatpush3.msra.mxu1 %v1334_v60  ;;  %v4107_v62 = vld [vmem:[%s5545_s7 + $0x10] sm:$0xff] }
 0x19f   : > { %v1441_v0 = vmul.f32 %v5026_v45, %v1435_v52  ;;  %4421 = vmatmul.mubr.msk.f32.vlgmr.msra.gmra.mxu1 %vm712_vm2, %v4093_v35  ;;  %4423 = vmatprep.subr.mxu1 %v1442_v61 }
 0x1a0   : > { %4424 = vmatpush3.msra.mxu1 %v1442_v61  ;;  %4427 = vmatprep.mubr.msk.f32.mxu1 %vm712_vm2, %v4096_v47 }
 0x1a1   : > { %v1536_v3 = vpop.permute.xlu1 %1535  ;;  %4425 = vmatprep.subr.mxu1 %v1441_v0 }
 0x1a2   : > { %v1542_v4 = vsel %vm1541_vm7, %v1530_v2, %v1536_v3  ;;  %4426 = vmatpush3.msra.mxu1 %v1441_v0  ;;  %v1638_v0 = vld [vmem:[%s5616_s8] sm:$0xff] }
 0x1a3   : > { %v1548_v5 = vmul.f32 %v4979_v28, %v1542_v4  ;;  %4428 = vmatmul.mubr.msk.f32.vlgmr.msra.gmra.mxu1 %vm712_vm2, %v4097_v1  ;;  %v1639_v1 = vld [vmem:[%s5616_s8 + $0x8] sm:$0xff] }
 0x1a4   : > { %4441 = vmatprep.mubr.msk.f32.mxu1 %vm712_vm2, %v1670_v58  ;;  %v4119_v58 = vld [vmem:[%s5545_s7 + $0x40] sm:$0xff] }
 0x1a5   : > { %4432 = vmatprep.subr.mxu0 %v1548_v5 }
 0x1a6   : > { %4433 = vmatpush3.msra.mxu0 %v1548_v5  ;;  %v683_v18 = vpop.permute.xlu0 %682 }
 0x1a7   : > { %4435 = vmatmul.mubr.msk.f32.vlgmr.msra.gmra.mxu0 %vm712_vm2, %v4102_v6 }
 0x1a8   : > { %4448 = vmatprep.mubr.msk.f32.mxu0 %vm712_vm2, %v4107_v62 }
 0x1aa   : > { %v587_v19 = vpop.permute.xlu0 %586 }
 0x1ab   : > { %v668_v44 = vadd.f32 %v4373_v7, %v587_v19 }
 0x1ae   : > { %v678_v23 = vpop.permute.xlu1 %677 }
 0x1b2   : > { %v582_v35 = vpop.permute.xlu1 %581 }
 0x1b3   : > { %v663_v47 = vadd.f32 %v662_v8, %v582_v35 }
 0x247   : > { %v4380_v10 = vpop.f32.mrf.mxu1 }
 0x248   : > { %v795_v21 = vadd.f32 %v4380_v10, %v683_v18 }
 0x249   : > { %v785_v11 = vpop.f32.mrf.mxu1 }
 0x24a   : > { %v794_v50 = vadd.f32 %v785_v11, %v678_v23 }
 0x24b   : > { %v4387_v12 = vpop.f32.mrf.mxu1 }
 0x24c   : > { %v901_v25 = vadd.f32 %v4387_v12, %v795_v21 }
 0x24d   : > { %v891_v13 = vpop.f32.mrf.mxu1 }
 0x24e   : > { %v900_v51 = vadd.f32 %v891_v13, %v794_v50 }
 0x24f   : > { %v4394_v14 = vpop.f32.mrf.mxu1 }
 0x250   : > { %v1008_v27 = vadd.f32 %v4394_v14, %v901_v25 }
 0x251   : > { %v998_v15 = vpop.f32.mrf.mxu1 }
 0x252   : > { %v1007_v53 = vadd.f32 %v998_v15, %v900_v51  ;;  %v4115_v51 = vld [vmem:[%s5545_s7 + $0x30] sm:$0xff] }
 0x253   : > { %v4401_v16 = vpop.f32.mrf.mxu1 }
 0x254   : > { %v1115_v32 = vadd.f32 %v4401_v16, %v1008_v27 }
 0x255   : > { %v1105_v17 = vpop.f32.mrf.mxu1 }
 0x256   : > { %v1114_v31 = vadd.f32 %v1105_v17, %v1007_v53 }
 0x257   : > { %v4408_v20 = vpop.f32.mrf.mxu1 }
 0x258   : > { %v1207_v34 = vadd.f32 %v4408_v20, %v1115_v32 }
 0x259   : > { %v1197_v22 = vpop.f32.mrf.mxu1 }
 0x25a   : > { %v1206_v55 = vadd.f32 %v1197_v22, %v1114_v31 }
 0x25b   : > { %v4415_v26 = vpop.f32.mrf.mxu1 }
 0x25c   : > { %v1314_v38 = vadd.f32 %v4415_v26, %v1207_v34  ;;  %v1671_v34 = vld [vmem:[%s5545_s7 + $0x8] sm:$0xff] }
 0x25d   : > { %v1304_v29 = vpop.f32.mrf.mxu1 }
 0x25e   : > { %v1313_v49 = vadd.f32 %v1304_v29, %v1206_v55  ;;  %v4112_v55 = vld [vmem:[%s5545_s7 + $0x28] sm:$0xff] }
 0x25f   : > { %v4422_v33 = vpop.f32.mrf.mxu1 }
 0x260   : > { %v1421_v40 = vadd.f32 %v4422_v33, %v1314_v38 }
 0x261   : > { %v1411_v37 = vpop.f32.mrf.mxu1 }
 0x262   : > { %v1420_v57 = vadd.f32 %v1411_v37, %v1313_v49 }
 0x263   : > { %v4429_v39 = vpop.f32.mrf.mxu1 }
 0x264   : > { %v1528_v41 = vadd.f32 %v4429_v39, %v1421_v40  ;;  %v4111_v40 = vld [vmem:[%s5545_s7 + $0x20] sm:$0xff] }
 0x265   : > { %v1518_v56 = vpop.f32.mrf.mxu1 }
 0x266   : > { %v1527_v60 = vadd.f32 %v1518_v56, %v1420_v57 }
 0x267   : > { %v4436_v42 = vpop.f32.mrf.mxu0 }
 0x268   : > { %v1635_v46 = vadd.f32 %v4436_v42, %v1528_v41 }
 0x269   : > { %v1625_v59 = vpop.f32.mrf.mxu0 }
 0x26a   : > { %v5059_v48 = vadd.f32 %v1635_v46, %v668_v44  ;;  %v1634_v61 = vadd.f32 %v1625_v59, %v1527_v60  ;;  %v4108_v44 = vld [vmem:[%s5545_s7 + $0x18] sm:$0xff] }
 0x26c   : > { %1662 = vrot.lane.b32.xlu1 %v5059_v48, %s5577_s20  ;;  %1656 = vrot.lane.b32.xlu0 %v5059_v48, %s5575_s18  ;;  %s5609_s18 = smov 127   ;;  %s5610_s20 = smov 55   ;;  %v5101_v52 = vadd.f32 %v1634_v61, %v663_v47  ;;  %v2062_v57 = vmul.f32 %v5059_v48, %v4971_v24  ;;  %v4116_v47 = vld [vmem:[%s5545_s7 + $0x38] sm:$0xff] }
 0x26e   : > { %v2061_v62 = vmul.f32 %v5101_v52, %v4971_v24 }
 0x270   : > { %1763 = vrot.lane.b32.xlu1 %v5059_v48, %s5602_s26  ;;  %1757 = vrot.lane.b32.xlu0 %v5059_v48, %s5603_s28 }
 0x274   : > { %1865 = vrot.lane.b32.xlu1 %v5059_v48, %s5604_s15  ;;  %1859 = vrot.lane.b32.xlu0 %v5059_v48, %s5605_s17 }
 0x278   : > { %1967 = vrot.lane.b32.xlu1 %v5059_v48, %s5606_s24  ;;  %1961 = vrot.lane.b32.xlu0 %v5059_v48, %s5607_s23 }
 0x27c   : > { %2157 = vrot.lane.b32.xlu1 %v5059_v48, %s5608_s22  ;;  %2151 = vrot.lane.b32.xlu0 %v5059_v48, %s5609_s18 }
 0x280   : > { %2259 = vrot.lane.b32.xlu1 %v5059_v48, %s5581_s25  ;;  %2253 = vrot.lane.b32.xlu0 %v5059_v48, %s5598_s19  ;;  %s5615_s25 = smov 56  }
 0x284   : > { %2361 = vrot.lane.b32.xlu1 %v5059_v48, %s5583_s27  ;;  %2355 = vrot.lane.b32.xlu0 %v5059_v48, %s5599_s21  ;;  %s5612_s27 = smov 9  }
 0x288   : > { %2463 = vrot.lane.b32.xlu1 %v5059_v48, %s5610_s20  ;;  %2457 = vrot.lane.b32.xlu0 %v5059_v48, %s5611_s16 }
 0x28c   : > { %1660 = vrot.lane.b32.xlu1 %v5101_v52, %s5612_s27  ;;  %1654 = vrot.lane.b32.xlu0 %v5101_v52, %s5613_s1 }
 0x290   : > { %1761 = vrot.lane.b32.xlu1 %v5101_v52, %s5602_s26  ;;  %1755 = vrot.lane.b32.xlu0 %v5101_v52, %s5603_s28 }
 0x294   : > { %1863 = vrot.lane.b32.xlu1 %v5101_v52, %s5604_s15  ;;  %1857 = vrot.lane.b32.xlu0 %v5101_v52, %s5605_s17 }
 0x298   : > { %1965 = vrot.lane.b32.xlu1 %v5101_v52, %s5606_s24  ;;  %1959 = vrot.lane.b32.xlu0 %v5101_v52, %s5607_s23 }
 0x29c   : > { %2155 = vrot.lane.b32.xlu1 %v5101_v52, %s5608_s22  ;;  %2149 = vrot.lane.b32.xlu0 %v5101_v52, %s5609_s18 }
 0x2a0   : > { %2257 = vrot.lane.b32.xlu1 %v5101_v52, %s5614_s0  ;;  %2251 = vrot.lane.b32.xlu0 %v5101_v52, %s5598_s19 }
 0x2a4   : > { %2359 = vrot.lane.b32.xlu1 %v5101_v52, %s5615_s25  ;;  %2353 = vrot.lane.b32.xlu0 %v5101_v52, %s5599_s21 }
 0x2a8   : > { %2461 = vrot.lane.b32.xlu1 %v5101_v52, %s5610_s20  ;;  %2455 = vrot.lane.b32.xlu0 %v5101_v52, %s5611_s16 }
 0x2ac   : > { %1642 = vperm.xlu1 %4640, %v1638_v0   ;;  %1647 = vperm.xlu0 %4639, %v1639_v1  }
 0x2de   : > { %v1663_v2 = vpop.permute.xlu1 %1662  ;;  %v1657_v3 = vpop.permute.xlu0 %1656 }
 0x2df   : > { %v1667_v4 = vsel %vm701_vm3, %v1657_v3, %v1663_v2  ;;  %v4120_v3 = vld [vmem:[%s5545_s7 + $0x48] sm:$0xff] }
 0x2e0   : > { %v1669_v5 = vmul.f32 %v1667_v4, %v4906_v36 }
 0x2e2   : > { %v1764_v6 = vpop.permute.xlu1 %1763  ;;  %4437 = vmatprep.subr.mxu1 %v1669_v5  ;;  %v1758_v7 = vpop.permute.xlu0 %1757 }
 0x2e3   : > { %v1768_v8 = vsel %vm589_vm1, %v1758_v7, %v1764_v6  ;;  %4438 = vmatpush3.msra.mxu1 %v1669_v5 }
 0x2e4   : > { %v1770_v10 = vmul.f32 %v1768_v8, %v4924_v54  ;;  %v4123_v8 = vld [vmem:[%s5545_s7 + $0x50] sm:$0xff] }
 0x2e6   : > { %v1866_v11 = vpop.permute.xlu1 %1865  ;;  %4444 = vmatprep.subr.mxu0 %v1770_v10  ;;  %v1860_v12 = vpop.permute.xlu0 %1859 }
 0x2e7   : > { %4445 = vmatpush3.msra.mxu0 %v1770_v10  ;;  %v1870_v29 = vsel %vm914_vm4, %v1860_v12, %v1866_v11  ;;  %v4127_v10 = vld [vmem:[%s5545_s7 + $0x60] sm:$0xff] }
 0x2e8   : > { %v1872_v37 = vmul.f32 %v1870_v29, %v4935_v63 }
 0x2ea   : > { %v1968_v13 = vpop.permute.xlu1 %1967  ;;  %v1962_v14 = vpop.permute.xlu0 %1961 }
 0x2eb   : > { %v1972_v19 = vsel %vm1021_vm5, %v1962_v14, %v1968_v13  ;;  %v4124_v13 = vld [vmem:[%s5545_s7 + $0x58] sm:$0xff] }
 0x2ec   : > { %v1974_v46 = vmul.f32 %v1972_v19, %v4951_v9 }
 0x2ee   : > { %v2158_v15 = vpop.permute.xlu1 %2157  ;;  %v2152_v16 = vpop.permute.xlu0 %2151 }
 0x2ef   : > { %v2162_v59 = vsel %vm1220_vm6, %v2152_v16, %v2158_v15 }
 0x2f0   : > { %v2164_v0 = vmul.f32 %v2162_v59, %v4986_v30 }
 0x2f2   : > { %v2260_v17 = vpop.permute.xlu1 %2259  ;;  %v2254_v18 = vpop.permute.xlu0 %2253 }
 0x2f3   : > { %v2264_v35 = vsel %vm1327_vm8, %v2254_v18, %v2260_v17  ;;  %v4131_v18 = vld [vmem:[%s5545_s7 + $0x70] sm:$0xff] }
 0x2f4   : > { %v2266_v4 = vmul.f32 %v2264_v35, %v5008_v43 }
 0x2f6   : > { %v5145_v20 = vpop.permute.xlu1 %2361  ;;  %v5147_v21 = vpop.permute.xlu0 %2355 }
 0x2f7   : > { %v2366_v6 = vsel %vm1434_vm9, %v5147_v21, %v5145_v20  ;;  %v4128_v20 = vld [vmem:[%s5545_s7 + $0x68] sm:$0xff] }
 0x2f8   : > { %v2368_v14 = vmul.f32 %v2366_v6, %v5026_v45 }
 0x2fa   : > { %v5149_v22 = vpop.permute.xlu1 %2463  ;;  %v5151_v25 = vpop.permute.xlu0 %2457 }
 0x2fb   : > { %v2468_v15 = vsel %vm1541_vm7, %v5151_v25, %v5149_v22 }
 0x2fc   : > { %v2470_v21 = vmul.f32 %v4979_v28, %v2468_v15 }
 0x2fe   : > { %v1661_v26 = vpop.permute.xlu1 %1660  ;;  %v1655_v27 = vpop.permute.xlu0 %1654 }
 0x2ff   : > { %v1666_v32 = vsel %vm701_vm3, %v1655_v27, %v1661_v26  ;;  %v4135_v26 = vld [vmem:[%s5545_s7 + $0x80] sm:$0xff] }
 0x300   : > { %v1668_v33 = vmul.f32 %v1666_v32, %v4906_v36  ;;  %v4132_v32 = vld [vmem:[%s5545_s7 + $0x78] sm:$0xff] }
 0x302   : > { %v1762_v38 = vpop.permute.xlu1 %1761  ;;  %4439 = vmatprep.subr.mxu1 %v1668_v33  ;;  %v1756_v39 = vpop.permute.xlu0 %1755 }
 0x303   : > { %v1767_v41 = vsel %vm589_vm1, %v1756_v39, %v1762_v38  ;;  %4440 = vmatpush3.msra.mxu1 %v1668_v33  ;;  %v4136_v39 = vld [vmem:[%s5545_s7 + $0x88] sm:$0xff] }
 0x304   : > { %v1769_v42 = vmul.f32 %v1767_v41, %v4924_v54  ;;  %4442 = vmatmul.mubr.msk.f32.vlgmr.msra.gmra.mxu1 %vm712_vm2, %v1671_v34  ;;  %4451 = vmatprep.subr.mxu1 %v1872_v37 }
 0x305   : > { %4452 = vmatpush3.msra.mxu1 %v1872_v37  ;;  %4455 = vmatprep.mubr.msk.f32.mxu1 %vm712_vm2, %v4111_v40 }
 0x306   : > { %v1864_v23 = vpop.permute.xlu1 %1863  ;;  %4446 = vmatprep.subr.mxu0 %v1769_v42  ;;  %v1858_v50 = vpop.permute.xlu0 %1857 }
 0x307   : > { %v1869_v53 = vsel %vm914_vm4, %v1858_v50, %v1864_v23  ;;  %4447 = vmatpush3.msra.mxu0 %v1769_v42 }
 0x308   : > { %v1871_v31 = vmul.f32 %v1869_v53, %v4935_v63  ;;  %4449 = vmatmul.mubr.msk.f32.vlgmr.msra.gmra.mxu0 %vm712_vm2, %v4108_v44  ;;  %4458 = vmatprep.subr.mxu0 %v1974_v46 }
 0x309   : > { %4459 = vmatpush3.msra.mxu0 %v1974_v46  ;;  %4462 = vmatprep.mubr.msk.f32.mxu0 %vm712_vm2, %v4115_v51 }
 0x30a   : > { %v1966_v49 = vpop.permute.xlu1 %1965  ;;  %4453 = vmatprep.subr.mxu1 %v1871_v31  ;;  %v1960_v56 = vpop.permute.xlu0 %1959 }
 0x30b   : > { %v1971_v60 = vsel %vm1021_vm5, %v1960_v56, %v1966_v49  ;;  %4454 = vmatpush3.msra.mxu1 %v1871_v31 }
 0x30c   : > { %v1973_v61 = vmul.f32 %v1971_v60, %v4951_v9  ;;  %4456 = vmatmul.mubr.msk.f32.vlgmr.msra.gmra.mxu1 %vm712_vm2, %v4112_v55  ;;  %4465 = vmatprep.subr.mxu1 %v2062_v57 }
 0x30d   : > { %4466 = vmatpush3.msra.mxu1 %v2062_v57  ;;  %4469 = vmatprep.mubr.msk.f32.mxu1 %vm712_vm2, %v4119_v58 }
 0x30e   : > { %v2156_v1 = vpop.permute.xlu1 %2155  ;;  %4460 = vmatprep.subr.mxu0 %v1973_v61  ;;  %v2150_v2 = vpop.permute.xlu0 %2149  ;;  %4467 = vmatprep.subr.mxu1 %v2061_v62 }
 0x30f   : > { %v2161_v5 = vsel %vm1220_vm6, %v2150_v2, %v2156_v1  ;;  %4461 = vmatpush3.msra.mxu0 %v1973_v61  ;;  %4468 = vmatpush3.msra.mxu1 %v2061_v62 }
 0x310   : > { %v2163_v7 = vmul.f32 %v2161_v5, %v4986_v30  ;;  %4463 = vmatmul.mubr.msk.f32.vlgmr.msra.gmra.mxu0 %vm712_vm2, %v4116_v47  ;;  %4472 = vmatprep.subr.mxu0 %v2164_v0 }
 0x311   : > { %4479 = vmatprep.subr.mxu1 %v2266_v4  ;;  %4470 = vmatmul.mubr.msk.f32.vlgmr.msra.gmra.mxu1 %vm712_vm2, %v4120_v3 }
 0x312   : > { %4473 = vmatpush3.msra.mxu0 %v2164_v0  ;;  %4480 = vmatpush3.msra.mxu1 %v2266_v4  ;;  %v2258_v11 = vpop.permute.xlu1 %2257  ;;  %v2252_v12 = vpop.permute.xlu0 %2251 }
 0x313   : > { %4474 = vmatprep.subr.mxu0 %v2163_v7  ;;  %v2263_v16 = vsel %vm1327_vm8, %v2252_v12, %v2258_v11  ;;  %4476 = vmatprep.mubr.msk.f32.mxu0 %vm712_vm2, %v4123_v8 }
 0x314   : > { %v2265_v17 = vmul.f32 %v2263_v16, %v5008_v43  ;;  %4475 = vmatpush3.msra.mxu0 %v2163_v7  ;;  %4483 = vmatprep.mubr.msk.f32.mxu1 %vm712_vm2, %v4127_v10  ;;  %v2591_v16 = vld [vmem:[%s5547_s9] sm:$0xff] }
 0x315   : > { %4477 = vmatmul.mubr.msk.f32.vlgmr.msra.gmra.mxu0 %vm712_vm2, %v4124_v13  ;;  %4486 = vmatprep.subr.mxu0 %v2368_v14 }
 0x316   : > { %4487 = vmatpush3.msra.mxu0 %v2368_v14  ;;  %v2360_v22 = vpop.permute.xlu1 %2359  ;;  %v2354_v25 = vpop.permute.xlu0 %2353  ;;  %4481 = vmatprep.subr.mxu1 %v2265_v17 }
 0x317   : > { %v2365_v27 = vsel %vm1434_vm9, %v2354_v25, %v2360_v22  ;;  %4482 = vmatpush3.msra.mxu1 %v2265_v17  ;;  %4490 = vmatprep.mubr.msk.f32.mxu0 %vm712_vm2, %v4131_v18  ;;  %v2559_v22 = vld [vmem:[%s5548_s10] sm:$0xff]  ;;  %v2560_v25 = vld [vmem:[%s5548_s10 + $0x8] sm:$0xff] }
 0x318   : > { %v2367_v29 = vmul.f32 %v2365_v27, %v5026_v45  ;;  %4484 = vmatmul.mubr.msk.f32.vlgmr.msra.gmra.mxu1 %vm712_vm2, %v4128_v20  ;;  %4493 = vmatprep.subr.mxu1 %v2470_v21  ;;  %v4141_v20 = vld [vmem:[%s5547_s9 + $0x10] sm:$0xff] }
 0x319   : > { %4494 = vmatpush3.msra.mxu1 %v2470_v21  ;;  %4497 = vmatprep.mubr.msk.f32.mxu1 %vm712_vm2, %v4135_v26 }
 0x31a   : > { %v2462_v33 = vpop.permute.xlu1 %2461  ;;  %4488 = vmatprep.subr.mxu0 %v2367_v29  ;;  %v2456_v34 = vpop.permute.xlu0 %2455 }
 0x31b   : > { %v2467_v37 = vsel %vm1541_vm7, %v2456_v34, %v2462_v33  ;;  %4489 = vmatpush3.msra.mxu0 %v2367_v29 }
 0x31c   : > { %v2469_v38 = vmul.f32 %v4979_v28, %v2467_v37  ;;  %4491 = vmatmul.mubr.msk.f32.vlgmr.msra.gmra.mxu0 %vm712_vm2, %v4132_v32 }
 0x31d   : > { %4504 = vmatprep.mubr.msk.f32.mxu0 %vm712_vm2, %v2591_v16 }
 0x31e   : > { %4495 = vmatprep.subr.mxu1 %v2469_v38 }
 0x31f   : > { %4496 = vmatpush3.msra.mxu1 %v2469_v38 }
 0x320   : > { %4498 = vmatmul.mubr.msk.f32.vlgmr.msra.gmra.mxu1 %vm712_vm2, %v4136_v39 }
 0x321   : > { %4511 = vmatprep.mubr.msk.f32.mxu1 %vm712_vm2, %v4141_v20 }
 0x327   : > { %v1648_v41 = vpop.permute.xlu0 %1647  ;;  %v1643_v5 = vpop.permute.xlu1 %1642 }
 0x3c4   : > { %v4443_v40 = vpop.f32.mrf.mxu1 }
 0x3c5   : > { %v1754_v44 = vadd.f32 %v4443_v40, %v1648_v41 }
 0x3c6   : > { %v1744_v42 = vpop.f32.mrf.mxu1 }
 0x3c7   : > { %v1753_v6 = vadd.f32 %v1744_v42, %v1643_v5 }
 0x3c8   : > { %v4450_v19 = vpop.f32.mrf.mxu0 }
 0x3c9   : > { %v1856_v50 = vadd.f32 %v4450_v19, %v1754_v44 }
 0x3ca   : > { %v1846_v46 = vpop.f32.mrf.mxu0 }
 0x3cb   : > { %v1855_v7 = vadd.f32 %v1846_v46, %v1753_v6  ;;  %v4149_v6 = vld [vmem:[%s5547_s9 + $0x30] sm:$0xff] }
 0x3cc   : > { %v4457_v23 = vpop.f32.mrf.mxu1 }
 0x3cd   : > { %v1958_v53 = vadd.f32 %v4457_v23, %v1856_v50 }
 0x3ce   : > { %v1948_v31 = vpop.f32.mrf.mxu1 }
 0x3cf   : > { %v1957_v8 = vadd.f32 %v1948_v31, %v1855_v7 }
 0x3d0   : > { %v4464_v51 = vpop.f32.mrf.mxu0 }
 0x3d1   : > { %v2060_v49 = vadd.f32 %v4464_v51, %v1958_v53  ;;  %v4471_v56 = vpop.f32.mrf.mxu1 }
 0x3d2   : > { %v2050_v55 = vpop.f32.mrf.mxu0 }
 0x3d3   : > { %v2148_v58 = vadd.f32 %v4471_v56, %v2060_v49  ;;  %v2138_v59 = vpop.f32.mrf.mxu1  ;;  %v2059_v10 = vadd.f32 %v2050_v55, %v1957_v8  ;;  %v4146_v8 = vld [vmem:[%s5547_s9 + $0x28] sm:$0xff] }
 0x3d5   : > { %v4478_v57 = vpop.f32.mrf.mxu0  ;;  %v2147_v11 = vadd.f32 %v2138_v59, %v2059_v10  ;;  %v2592_v59 = vld [vmem:[%s5547_s9 + $0x8] sm:$0xff] }
 0x3d6   : > { %v2250_v61 = vadd.f32 %v4478_v57, %v2148_v58 }
 0x3d7   : > { %v2240_v60 = vpop.f32.mrf.mxu0 }
 0x3d8   : > { %v4485_v35 = vpop.f32.mrf.mxu1  ;;  %v2249_v12 = vadd.f32 %v2240_v60, %v2147_v11 }
 0x3d9   : > { %v2352_v47 = vadd.f32 %v4485_v35, %v2250_v61 }
 0x3da   : > { %v2342_v0 = vpop.f32.mrf.mxu1 }
 0x3db   : > { %v2351_v14 = vadd.f32 %v2342_v0, %v2249_v12 }
 0x3dc   : > { %v4492_v62 = vpop.f32.mrf.mxu0 }
 0x3dd   : > { %v2454_v1 = vadd.f32 %v4492_v62, %v2352_v47  ;;  %v4145_v62 = vld [vmem:[%s5547_s9 + $0x20] sm:$0xff] }
 0x3de   : > { %v2444_v13 = vpop.f32.mrf.mxu0 }
 0x3df   : > { %v2453_v17 = vadd.f32 %v2444_v13, %v2351_v14 }
 0x3e0   : > { %v4499_v2 = vpop.f32.mrf.mxu1 }
 0x3e1   : > { %v2556_v3 = vadd.f32 %v4499_v2, %v2454_v1  ;;  %v4142_v1 = vld [vmem:[%s5547_s9 + $0x18] sm:$0xff] }
 0x3e2   : > { %v2546_v15 = vpop.f32.mrf.mxu1 }
 0x3e3   : > { %v5253_v4 = vmax.f32 %v2556_v3, 0.0  ;;  %v2555_v18 = vadd.f32 %v2546_v15, %v2453_v17 }
 0x3e5   : > { %2583 = vrot.lane.b32.xlu1 %v5253_v4, %s5612_s27  ;;  %2577 = vrot.lane.b32.xlu0 %v5253_v4, %s5613_s1  ;;  %v5295_v21 = vmax.f32 %v2555_v18, 0.0  ;;  %v2983_v12 = vmul.f32 %v5253_v4, %v4971_v24 }
 0x3e7   : > { %v2982_v17 = vmul.f32 %v5295_v21, %v4971_v24 }
 0x3e9   : > { %2684 = vrot.lane.b32.xlu1 %v5253_v4, %s5602_s26  ;;  %2678 = vrot.lane.b32.xlu0 %v5253_v4, %s5603_s28 }
 0x3ed   : > { %2786 = vrot.lane.b32.xlu1 %v5253_v4, %s5604_s15  ;;  %2780 = vrot.lane.b32.xlu0 %v5253_v4, %s5605_s17 }
 0x3f1   : > { %2888 = vrot.lane.b32.xlu1 %v5253_v4, %s5606_s24  ;;  %2882 = vrot.lane.b32.xlu0 %v5253_v4, %s5607_s23 }
 0x3f5   : > { %3078 = vrot.lane.b32.xlu1 %v5253_v4, %s5608_s22  ;;  %3072 = vrot.lane.b32.xlu0 %v5253_v4, %s5609_s18 }
 0x3f9   : > { %3180 = vrot.lane.b32.xlu1 %v5253_v4, %s5614_s0  ;;  %3174 = vrot.lane.b32.xlu0 %v5253_v4, %s5598_s19 }
 0x3fd   : > { %3282 = vrot.lane.b32.xlu1 %v5253_v4, %s5615_s25  ;;  %3276 = vrot.lane.b32.xlu0 %v5253_v4, %s5599_s21 }
 0x401   : > { %3384 = vrot.lane.b32.xlu1 %v5253_v4, %s5610_s20  ;;  %3378 = vrot.lane.b32.xlu0 %v5253_v4, %s5611_s16  ;;  %v4150_v4 = vld [vmem:[%s5547_s9 + $0x38] sm:$0xff] }
 0x405   : > { %2581 = vrot.lane.b32.xlu1 %v5295_v21, %s5612_s27  ;;  %2575 = vrot.lane.b32.xlu0 %v5295_v21, %s5613_s1  ;;  %s4197_s1 = sshll.u32 %s5618_s30, 4 }
 0x409   : > { %2682 = vrot.lane.b32.xlu1 %v5295_v21, %s5602_s26  ;;  %2676 = vrot.lane.b32.xlu0 %v5295_v21, %s5603_s28  ;;  %s467_s26 = scalar_lea.vmem %s5552_s14, %s4197_s1 }
 0x40d   : > { %2784 = vrot.lane.b32.xlu1 %v5295_v21, %s5604_s15  ;;  %2778 = vrot.lane.b32.xlu0 %v5295_v21, %s5605_s17 }
 0x411   : > { %2886 = vrot.lane.b32.xlu1 %v5295_v21, %s5606_s24  ;;  %2880 = vrot.lane.b32.xlu0 %v5295_v21, %s5607_s23 }
 0x415   : > { %3076 = vrot.lane.b32.xlu1 %v5295_v21, %s5608_s22  ;;  %3070 = vrot.lane.b32.xlu0 %v5295_v21, %s5609_s18 }
 0x419   : > { %3178 = vrot.lane.b32.xlu1 %v5295_v21, %s5614_s0  ;;  %3172 = vrot.lane.b32.xlu0 %v5295_v21, %s5598_s19 }
 0x41d   : > { %3280 = vrot.lane.b32.xlu1 %v5295_v21, %s5615_s25  ;;  %3274 = vrot.lane.b32.xlu0 %v5295_v21, %s5599_s21 }
 0x421   : > { %3382 = vrot.lane.b32.xlu1 %v5295_v21, %s5610_s20  ;;  %3376 = vrot.lane.b32.xlu0 %v5295_v21, %s5611_s16 }
 0x425   : > { %2563 = vperm.xlu1 %4640, %v2559_v22   ;;  %2568 = vperm.xlu0 %4639, %v2560_v25  }
 0x457   : > { %v2584_v26 = vpop.permute.xlu1 %2583  ;;  %v2578_v27 = vpop.permute.xlu0 %2577 }
 0x458   : > { %v2588_v29 = vsel %vm701_vm3, %v2578_v27, %v2584_v26  ;;  %v4157_v27 = vld [vmem:[%s5547_s9 + $0x50] sm:$0xff] }
 0x459   : > { %v2590_v32 = vmul.f32 %v2588_v29, %v4906_v36  ;;  %v4161_v29 = vld [vmem:[%s5547_s9 + $0x60] sm:$0xff] }
 0x45b   : > { %v2685_v33 = vpop.permute.xlu1 %2684  ;;  %4500 = vmatprep.subr.mxu0 %v2590_v32  ;;  %v2679_v34 = vpop.permute.xlu0 %2678 }
 0x45c   : > { %v2689_v37 = vsel %vm589_vm1, %v2679_v34, %v2685_v33  ;;  %4501 = vmatpush3.msra.mxu0 %v2590_v32 }
 0x45d   : > { %v2691_v38 = vmul.f32 %v2689_v37, %v4924_v54 }
 0x45f   : > { %v2787_v39 = vpop.permute.xlu1 %2786  ;;  %4507 = vmatprep.subr.mxu1 %v2691_v38  ;;  %v2781_v40 = vpop.permute.xlu0 %2780 }
 0x460   : > { %4508 = vmatpush3.msra.mxu1 %v2691_v38  ;;  %v2791_v56 = vsel %vm914_vm4, %v2781_v40, %v2787_v39  ;;  %v4165_v40 = vld [vmem:[%s5547_s9 + $0x70] sm:$0xff] }
 0x461   : > { %v2793_v60 = vmul.f32 %v2791_v56, %v4935_v63 }
 0x463   : > { %v2889_v19 = vpop.permute.xlu1 %2888  ;;  %v2883_v41 = vpop.permute.xlu0 %2882 }
 0x464   : > { %v2893_v47 = vsel %vm1021_vm5, %v2883_v41, %v2889_v19  ;;  %v4162_v19 = vld [vmem:[%s5547_s9 + $0x68] sm:$0xff] }
 0x465   : > { %v2895_v2 = vmul.f32 %v2893_v47, %v4951_v9 }
 0x467   : > { %v3079_v42 = vpop.permute.xlu1 %3078  ;;  %v3073_v44 = vpop.permute.xlu0 %3072 }
 0x468   : > { %v3083_v13 = vsel %vm1220_vm6, %v3073_v44, %v3079_v42 }
 0x469   : > { %v3085_v18 = vmul.f32 %v3083_v13, %v4986_v30 }
 0x46b   : > { %v3181_v46 = vpop.permute.xlu1 %3180  ;;  %v3175_v23 = vpop.permute.xlu0 %3174 }
 0x46c   : > { %v3185_v15 = vsel %vm1327_vm8, %v3175_v23, %v3181_v46 }
 0x46d   : > { %v3187_v25 = vmul.f32 %v3185_v15, %v5008_v43 }
 0x46f   : > { %v5339_v50 = vpop.permute.xlu1 %3282  ;;  %v5341_v51 = vpop.permute.xlu0 %3276 }
 0x470   : > { %v3287_v21 = vsel %vm1434_vm9, %v5341_v51, %v5339_v50  ;;  %v4166_v50 = vld [vmem:[%s5547_s9 + $0x78] sm:$0xff] }
 0x471   : > { %v3289_v34 = vmul.f32 %v3287_v21, %v5026_v45 }
 0x473   : > { %v5343_v53 = vpop.permute.xlu1 %3384  ;;  %v5345_v31 = vpop.permute.xlu0 %3378 }
 0x474   : > { %v3389_v37 = vsel %vm1541_vm7, %v5345_v31, %v5343_v53 }
 0x475   : > { %v3391_v41 = vmul.f32 %v4979_v28, %v3389_v37 }
 0x477   : > { %v2582_v55 = vpop.permute.xlu1 %2581  ;;  %v2576_v49 = vpop.permute.xlu0 %2575 }
 0x478   : > { %v2587_v57 = vsel %vm701_vm3, %v2576_v49, %v2582_v55  ;;  %v3480_v49 = vld [vmem:[%s5550_s12] sm:$0xff] }
 0x479   : > { %v2589_v58 = vmul.f32 %v2587_v57, %v4906_v36 }
 0x47b   : > { %v2683_v35 = vpop.permute.xlu1 %2682  ;;  %4502 = vmatprep.subr.mxu0 %v2589_v58  ;;  %v2677_v61 = vpop.permute.xlu0 %2676 }
 0x47c   : > { %v2688_v0 = vsel %vm589_vm1, %v2677_v61, %v2683_v35  ;;  %4503 = vmatpush3.msra.mxu0 %v2589_v58 }
 0x47d   : > { %v2690_v36 = vmul.f32 %v2688_v0, %v4924_v54  ;;  %4505 = vmatmul.mubr.msk.f32.vlgmr.msra.gmra.mxu0 %vm712_vm2, %v2592_v59  ;;  %4514 = vmatprep.subr.mxu0 %v2793_v60 }
 0x47e   : > { %4515 = vmatpush3.msra.mxu0 %v2793_v60  ;;  %4518 = vmatprep.mubr.msk.f32.mxu0 %vm712_vm2, %v4145_v62 }
 0x47f   : > { %v2785_v3 = vpop.permute.xlu1 %2784  ;;  %4509 = vmatprep.subr.mxu1 %v2690_v36  ;;  %v2779_v5 = vpop.permute.xlu0 %2778 }
 0x480   : > { %v2790_v54 = vsel %vm914_vm4, %v2779_v5, %v2785_v3  ;;  %4510 = vmatpush3.msra.mxu1 %v2690_v36 }
 0x481   : > { %v2792_v7 = vmul.f32 %v2790_v54, %v4935_v63  ;;  %4512 = vmatmul.mubr.msk.f32.vlgmr.msra.gmra.mxu1 %vm712_vm2, %v4142_v1  ;;  %4521 = vmatprep.subr.mxu1 %v2895_v2  ;;  %v4153_v63 = vld [vmem:[%s5547_s9 + $0x40] sm:$0xff] }
 0x482   : > { %4522 = vmatpush3.msra.mxu1 %v2895_v2  ;;  %4525 = vmatprep.mubr.msk.f32.mxu1 %vm712_vm2, %v4149_v6 }
 0x483   : > { %v2887_v10 = vpop.permute.xlu1 %2886  ;;  %4516 = vmatprep.subr.mxu0 %v2792_v7  ;;  %v2881_v11 = vpop.permute.xlu0 %2880 }
 0x484   : > { %v2892_v14 = vsel %vm1021_vm5, %v2881_v11, %v2887_v10  ;;  %4517 = vmatpush3.msra.mxu0 %v2792_v7 }
 0x485   : > { %v2894_v16 = vmul.f32 %v2892_v14, %v4951_v9  ;;  %4519 = vmatmul.mubr.msk.f32.vlgmr.msra.gmra.mxu0 %vm712_vm2, %v4146_v8  ;;  %4528 = vmatprep.subr.mxu0 %v2983_v12  ;;  %v4154_v9 = vld [vmem:[%s5547_s9 + $0x48] sm:$0xff] }
 0x486   : > { %4529 = vmatpush3.msra.mxu0 %v2983_v12  ;;  %4532 = vmatprep.mubr.msk.f32.mxu0 %vm712_vm2, %v4153_v63 }
 0x487   : > { %v3077_v20 = vpop.permute.xlu1 %3076  ;;  %4523 = vmatprep.subr.mxu1 %v2894_v16  ;;  %v3071_v22 = vpop.permute.xlu0 %3070  ;;  %4530 = vmatprep.subr.mxu0 %v2982_v17 }
 0x488   : > { %v3082_v24 = vsel %vm1220_vm6, %v3071_v22, %v3077_v20  ;;  %4524 = vmatpush3.msra.mxu1 %v2894_v16  ;;  %4531 = vmatpush3.msra.mxu0 %v2982_v17 }
 0x489   : > { %v3084_v26 = vmul.f32 %v3082_v24, %v4986_v30  ;;  %4526 = vmatmul.mubr.msk.f32.vlgmr.msra.gmra.mxu1 %vm712_vm2, %v4150_v4  ;;  %4535 = vmatprep.subr.mxu1 %v3085_v18  ;;  %v4158_v30 = vld [vmem:[%s5547_s9 + $0x58] sm:$0xff] }
 0x48a   : > { %4542 = vmatprep.subr.mxu0 %v3187_v25  ;;  %4533 = vmatmul.mubr.msk.f32.vlgmr.msra.gmra.mxu0 %vm712_vm2, %v4154_v9 }
 0x48b   : > { %4536 = vmatpush3.msra.mxu1 %v3085_v18  ;;  %4543 = vmatpush3.msra.mxu0 %v3187_v25  ;;  %v3179_v32 = vpop.permute.xlu1 %3178  ;;  %v3173_v33 = vpop.permute.xlu0 %3172 }
 0x48c   : > { %4537 = vmatprep.subr.mxu1 %v3084_v26  ;;  %v3184_v38 = vsel %vm1327_vm8, %v3173_v33, %v3179_v32  ;;  %4539 = vmatprep.mubr.msk.f32.mxu1 %vm712_vm2, %v4157_v27  ;;  %v3481_v32 = vld [vmem:[%s5550_s12 + $0x8] sm:$0xff] }
 0x48d   : > { %v3186_v39 = vmul.f32 %v3184_v38, %v5008_v43  ;;  %4538 = vmatpush3.msra.mxu1 %v3084_v26  ;;  %4546 = vmatprep.mubr.msk.f32.mxu0 %vm712_vm2, %v4161_v29  ;;  %v4169_v43 = vld [vmem:[%s5547_s9 + $0x80] sm:$0xff] }
 0x48e   : > { %4540 = vmatmul.mubr.msk.f32.vlgmr.msra.gmra.mxu1 %vm712_vm2, %v4158_v30  ;;  %4549 = vmatprep.subr.mxu1 %v3289_v34 }
 0x48f   : > { %4550 = vmatpush3.msra.mxu1 %v3289_v34  ;;  %v3281_v42 = vpop.permute.xlu1 %3280  ;;  %v3275_v44 = vpop.permute.xlu0 %3274  ;;  %4544 = vmatprep.subr.mxu0 %v3186_v39 }
 0x490   : > { %v3286_v46 = vsel %vm1434_vm9, %v3275_v44, %v3281_v42  ;;  %4545 = vmatpush3.msra.mxu0 %v3186_v39  ;;  %4553 = vmatprep.mubr.msk.f32.mxu1 %vm712_vm2, %v4165_v40 }
 0x491   : > { %v3288_v23 = vmul.f32 %v3286_v46, %v5026_v45  ;;  %4547 = vmatmul.mubr.msk.f32.vlgmr.msra.gmra.mxu0 %vm712_vm2, %v4162_v19  ;;  %4556 = vmatprep.subr.mxu0 %v3391_v41  ;;  %v4170_v45 = vld [vmem:[%s5547_s9 + $0x88] sm:$0xff] }
 0x492   : > { %4557 = vmatpush3.msra.mxu0 %v3391_v41  ;;  %4560 = vmatprep.mubr.msk.f32.mxu0 %vm712_vm2, %v4169_v43 }
 0x493   : > { %v3383_v51 = vpop.permute.xlu1 %3382  ;;  %4551 = vmatprep.subr.mxu1 %v3288_v23  ;;  %v3377_v53 = vpop.permute.xlu0 %3376 }
 0x494   : > { %v3388_v31 = vsel %vm1541_vm7, %v3377_v53, %v3383_v51  ;;  %4552 = vmatpush3.msra.mxu1 %v3288_v23 }
 0x495   : > { %v3390_v55 = vmul.f32 %v4979_v28, %v3388_v31  ;;  %4554 = vmatmul.mubr.msk.f32.vlgmr.msra.gmra.mxu1 %vm712_vm2, %v4166_v50 }
 0x496   : > { %4567 = vmatprep.mubr.msk.f32.mxu1 %vm712_vm2, %v3480_v49 }
 0x497   : > { %4558 = vmatprep.subr.mxu0 %v3390_v55 }
 0x498   : > { %4559 = vmatpush3.msra.mxu0 %v3390_v55 }
 0x499   : > { %4561 = vmatmul.mubr.msk.f32.vlgmr.msra.gmra.mxu0 %vm712_vm2, %v4170_v45 }
 0x4a0   : > { %v2569_v28 = vpop.permute.xlu0 %2568  ;;  %v2564_v35 = vpop.permute.xlu1 %2563 }
 0x53d   : > { %v4506_v56 = vpop.f32.mrf.mxu0 }
 0x53e   : > { %v2675_v60 = vadd.f32 %v4506_v56, %v2569_v28 }
 0x53f   : > { %v2665_v57 = vpop.f32.mrf.mxu0 }
 0x540   : > { %v2674_v62 = vadd.f32 %v2665_v57, %v2564_v35  ;;  %v3563_v57 = vld [vmem:[%s5551_s13] sm:$0xff] }
 0x541   : > { %v4513_v58 = vpop.f32.mrf.mxu1  ;;  %4574 = vmatprep.mubr.msk.f32.mxu0 %vm712_vm2, %v3563_v57 }
 0x542   : > { %v2777_v47 = vadd.f32 %v4513_v58, %v2675_v60  ;;  %v3564_v58 = vld [vmem:[%s5551_s13 + $0x8] sm:$0xff] }
 0x543   : > { %v2767_v61 = vpop.f32.mrf.mxu1 }
 0x544   : > { %v2776_v1 = vadd.f32 %v2767_v61, %v2674_v62 }
 0x545   : > { %v4520_v59 = vpop.f32.mrf.mxu0 }
 0x546   : > { %v2879_v2 = vadd.f32 %v4520_v59, %v2777_v47 }
 0x547   : > { %v2869_v0 = vpop.f32.mrf.mxu0 }
 0x548   : > { %v2878_v6 = vadd.f32 %v2869_v0, %v2776_v1 }
 0x549   : > { %v4527_v36 = vpop.f32.mrf.mxu1 }
 0x54a   : > { %v4534_v5 = vpop.f32.mrf.mxu0  ;;  %v2981_v54 = vadd.f32 %v4527_v36, %v2879_v2 }
 0x54b   : > { %v2971_v3 = vpop.f32.mrf.mxu1 }
 0x54c   : > { %v2980_v7 = vadd.f32 %v2971_v3, %v2878_v6  ;;  %v3059_v8 = vpop.f32.mrf.mxu0  ;;  %v3069_v11 = vadd.f32 %v4534_v5, %v2981_v54 }
 0x54e   : > { %v4541_v10 = vpop.f32.mrf.mxu1  ;;  %v3068_v63 = vadd.f32 %v3059_v8, %v2980_v7 }
 0x54f   : > { %v3171_v14 = vadd.f32 %v4541_v10, %v3069_v11 }
 0x550   : > { %v3161_v13 = vpop.f32.mrf.mxu1 }
 0x551   : > { %v4548_v12 = vpop.f32.mrf.mxu0  ;;  %v3170_v17 = vadd.f32 %v3161_v13, %v3068_v63 }
 0x552   : > { %v3273_v4 = vadd.f32 %v4548_v12, %v3171_v14 }
 0x553   : > { %v3263_v15 = vpop.f32.mrf.mxu0 }
 0x554   : > { %v3272_v20 = vadd.f32 %v3263_v15, %v3170_v17 }
 0x555   : > { %v4555_v16 = vpop.f32.mrf.mxu1 }
 0x556   : > { %v3375_v22 = vadd.f32 %v4555_v16, %v3273_v4 }
 0x557   : > { %v3365_v18 = vpop.f32.mrf.mxu1 }
 0x558   : > { %v3374_v25 = vadd.f32 %v3365_v18, %v3272_v20 }
 0x559   : > { %v4562_v9 = vpop.f32.mrf.mxu0 }
 0x55a   : > { %v3477_v24 = vadd.f32 %v4562_v9, %v3375_v22 }
 0x55b   : > { %v3467_v21 = vpop.f32.mrf.mxu0 }
 0x55c   : > { %v5452_v26 = vadd.f32 %v3477_v24, %v5059_v48  ;;  %v3476_v27 = vadd.f32 %v3467_v21, %v3374_v25 }
 0x55e   : > { %v5455_v29 = vadd.f32 %v3476_v27, %v5101_v52  ;;  %4563 = vmatprep.subr.mxu1 %v5452_v26  ;;  %4570 = vmatprep.subr.mxu0 %v5452_v26 }
 0x55f   : > { %4564 = vmatpush3.msra.mxu1 %v5452_v26  ;;  %4571 = vmatpush3.msra.mxu0 %v5452_v26 }
 0x560   : > { %4565 = vmatprep.subr.mxu1 %v5455_v29  ;;  %4572 = vmatprep.subr.mxu0 %v5455_v29 }
 0x561   : > { %4566 = vmatpush3.msra.mxu1 %v5455_v29  ;;  %4573 = vmatpush3.msra.mxu0 %v5455_v29 }
 0x562   : > { %4568 = vmatmul.mubr.msk.f32.vlgmr.msra.gmra.mxu1 %vm712_vm2, %v3481_v32  ;;  %4577 = vmatprep.subr.mxu1 %v5452_v26 }
 0x563   : > { %4578 = vmatpush3.msra.mxu1 %v5452_v26  ;;  %4575 = vmatmul.mubr.msk.f32.vlgmr.msra.gmra.mxu0 %vm712_vm2, %v3564_v58 }
 0x564   : > { %4579 = vmatprep.subr.mxu1 %v5455_v29 }
 0x565   : > { %4580 = vmatpush3.msra.mxu1 %v5455_v29 }
 0x622   : > { %v4569_v48 = vpop.f32.mrf.mxu1 }
 0x624   : > { %v3554_v52 = vpop.f32.mrf.mxu1 }
 0x625   : > { %3646 = vxpose.xlu0.b32.start [1/2] (short) (narrow) %v3554_v52, 64 }
 0x629   : > { %3647 = vxpose.xlu0.b32.end [2/2] (short) (narrow) %v4569_v48, 64 }
 0x6a1   : > { %v3662_v33 = vpop.trf.xlu0 }
 0x6a2   : > { %4581 = vmatprep.mubr.msk.f32.mxu1 %vm712_vm2, %v3662_v33 }
 0x6a5   : > { %v3663_v30 = vpop.trf.xlu0 }
 0x6a6   : > { %4582 = vmatmul.mubr.msk.f32.vlgmr.msra.gmra.mxu1 %vm712_vm2, %v3663_v30 }
 0x6a9   : > { %v3664_v34 = vpop.trf.xlu0 }
 0x6aa   : > { %4584 = vmatprep.mubr.msk.f32.mxu1 %vm712_vm2, %v3664_v34 }
 0x6ad   : > { %v3665_v37 = vpop.trf.xlu0 }
 0x6ae   : > { %4585 = vmatmul.mubr.msk.f32.gmra.mxu1 %vm712_vm2, %v3665_v37 }
 0x6b1   : > { %v3666_v38 = vpop.trf.xlu0 }
 0x6b2   : > { %4587 = vmatprep.mubr.msk.f32.mxu1 %vm712_vm2, %v3666_v38  ;;  %v4576_v38 = vpop.f32.mrf.mxu0 }
 0x6b5   : > { %v3667_v39 = vpop.trf.xlu0 }
 0x6b6   : > { %4588 = vmatmul.mubr.msk.f32.gmra.mxu1 %vm712_vm2, %v3667_v39  ;;  %v3637_v39 = vpop.f32.mrf.mxu0 }
 0x6b7   : > { %4609 = vmatprep.mubr.msk.f32.mxu0 %vm3807_vm10, %v3637_v39 }
 0x6b9   : > { %v3668_v40 = vpop.trf.xlu0 }
 0x6ba   : > { %4590 = vmatprep.mubr.msk.f32.mxu1 %vm712_vm2, %v3668_v40 }
 0x6bd   : > { %v3669_v19 = vpop.trf.xlu0 }
 0x6be   : > { %4591 = vmatmul.mubr.msk.f32.gmra.mxu1 %vm712_vm2, %v3669_v19 }
 0x766   : > { %v4583_v41 = vpop.f32.mrf.mxu1 }
 0x767   : > { %v3811_v28 = vsel %vm3807_vm10, %v4583_v41, -inf }
 0x768   : > { %v5481_v42 = vpop.f32.mrf.mxu1 }
 0x769   : > { %v3808_v59 = vsel %vm3807_vm10, %v5481_v42, -inf }
 0x76e   : > { %v4586_v44 = vpop.f32.mrf.mxu1 }
 0x76f   : > { %v3817_v49 = vsel %vm3807_vm10, %v4586_v44, -inf }
 0x770   : > { %v3778_v43 = vpop.f32.mrf.mxu1 }
 0x771   : > { %v3814_v56 = vsel %vm3807_vm10, %v3778_v43, -inf }
 0x776   : > { %v4589_v46 = vpop.f32.mrf.mxu1 }
 0x777   : > { %v3823_v55 = vsel %vm3807_vm10, %v4589_v46, -inf }
 0x778   : > { %v3788_v23 = vpop.f32.mrf.mxu1 }
 0x779   : > { %v3820_v45 = vsel %vm3807_vm10, %v3788_v23, -inf }
 0x77e   : > { %v4592_v50 = vpop.f32.mrf.mxu1 }
 0x77f   : > { %v3829_v51 = vsel %vm3807_vm10, %v4592_v50, -inf }
 0x780   : > { %3830 = vmax.xlane.f32.xlu1 %v3829_v51  ;;  %v3798_v53 = vpop.f32.mrf.mxu1 }
 0x781   : > { %v3826_v31 = vsel %vm3807_vm10, %v3798_v53, -inf }
 0x782   : > { %3827 = vmax.xlane.f32.xlu0 %v3826_v31 }
 0x784   : > { %3824 = vmax.xlane.f32.xlu1 %v3823_v55 }
 0x788   : > { %3821 = vmax.xlane.f32.xlu1 %v3820_v45 }
 0x78c   : > { %3818 = vmax.xlane.f32.xlu1 %v3817_v49 }
 0x790   : > { %3815 = vmax.xlane.f32.xlu1 %v3814_v56 }
 0x794   : > { %3812 = vmax.xlane.f32.xlu1 %v3811_v28 }
 0x798   : > { %3809 = vmax.xlane.f32.xlu1 %v3808_v59 }
 0x809   : > { %v3831_v60 = vpop.xlane.xlu1 %3830 }
 0x80a   : > { %v3839_v35 = vsub.f32 %v4592_v50, %v3831_v60 }
 0x80b   : > { %v3828_v61 = vpop.xlane.xlu0 %3827 }
 0x80c   : > { %v3854_v62 = vmul.f32 1.442695, %v3839_v35  ;;  %v3838_v47 = vsub.f32 %v3798_v53, %v3828_v61 }
 0x80d   : > { %v3825_v0 = vpop.xlane.xlu1 %3824 }
 0x80e   : > { %4641 = vpow2.f32 %v3854_v62  ;;  %v3852_v36 = vmul.f32 1.442695, %v3838_v47  ;;  %v3837_v1 = vsub.f32 %v4589_v46, %v3825_v0 }
 0x810   : > { %4643 = vpow2.f32 %v3852_v36  ;;  %v3850_v2 = vmul.f32 1.442695, %v3837_v1 }
 0x811   : > { %v3822_v3 = vpop.xlane.xlu1 %3821 }
 0x812   : > { %v3836_v5 = vsub.f32 %v3788_v23, %v3822_v3  ;;  %4645 = vpow2.f32 %v3850_v2 }
 0x814   : > { %v3848_v6 = vmul.f32 1.442695, %v3836_v5 }
 0x815   : > { %v3819_v54 = vpop.xlane.xlu1 %3818 }
 0x816   : > { %v3835_v7 = vsub.f32 %v4586_v44, %v3819_v54  ;;  %4647 = vpow2.f32 %v3848_v6 }
 0x818   : > { %v3846_v8 = vmul.f32 1.442695, %v3835_v7 }
 0x819   : > { %v3816_v10 = vpop.xlane.xlu1 %3815 }
 0x81a   : > { %v3834_v11 = vsub.f32 %v3778_v43, %v3816_v10  ;;  %4649 = vpow2.f32 %v3846_v8 }
 0x81b   : > { %v4642_v12 = vpop.eup %4641 }
 0x81c   : > { %v3844_v63 = vmul.f32 1.442695, %v3834_v11  ;;  %v3877_v13 = vsel %vm3807_vm10, %v4642_v12, 0.0 }
 0x81d   : > { %v4644_v14 = vpop.eup %4643  ;;  %3878 = vadd.xlane.f32.xlu1 %v3877_v13  ;;  %v3813_v15 = vpop.xlane.xlu1 %3812 }
 0x81e   : > { %v3833_v16 = vsub.f32 %v4583_v41, %v3813_v15  ;;  %4651 = vpow2.f32 %v3844_v63  ;;  %v3874_v4 = vsel %vm3807_vm10, %v4644_v14, 0.0 }
 0x81f   : > { %v4646_v18 = vpop.eup %4645 }
 0x820   : > { %v3842_v17 = vmul.f32 1.442695, %v3833_v16  ;;  %v3871_v25 = vsel %vm3807_vm10, %v4646_v18, 0.0 }
 0x821   : > { %v3810_v20 = vpop.xlane.xlu1 %3809  ;;  %3875 = vadd.xlane.f32.xlu1 %v3874_v4 }
 0x822   : > { %v3832_v22 = vsub.f32 %v5481_v42, %v3810_v20  ;;  %4653 = vpow2.f32 %v3842_v17 }
 0x823   : > { %v4648_v24 = vpop.eup %4647 }
 0x824   : > { %v3840_v9 = vmul.f32 1.442695, %v3832_v22  ;;  %v3868_v21 = vsel %vm3807_vm10, %v4648_v24, 0.0 }
 0x825   : > { %3872 = vadd.xlane.f32.xlu1 %v3871_v25 }
 0x826   : > { %4655 = vpow2.f32 %v3840_v9 }
 0x827   : > { %v4650_v27 = vpop.eup %4649 }
 0x828   : > { %v3865_v32 = vsel %vm3807_vm10, %v4650_v27, 0.0 }
 0x829   : > { %3869 = vadd.xlane.f32.xlu1 %v3868_v21 }
 0x82b   : > { %v4652_v48 = vpop.eup %4651 }
 0x82c   : > { %v3862_v52 = vsel %vm3807_vm10, %v4652_v48, 0.0 }
 0x82d   : > { %3866 = vadd.xlane.f32.xlu1 %v3865_v32 }
 0x82f   : > { %v4654_v33 = vpop.eup %4653 }
 0x830   : > { %v3859_v30 = vsel %vm3807_vm10, %v4654_v33, 0.0 }
 0x831   : > { %3863 = vadd.xlane.f32.xlu1 %v3862_v52 }
 0x833   : > { %v4656_v34 = vpop.eup %4655 }
 0x834   : > { %v3856_v37 = vsel %vm3807_vm10, %v4656_v34, 0.0 }
 0x835   : > { %3860 = vadd.xlane.f32.xlu1 %v3859_v30 }
 0x839   : > { %3857 = vadd.xlane.f32.xlu1 %v3856_v37 }
 0x8a6   : > { %v3879_v40 = vpop.xlane.xlu1 %3878 }
 0x8a7   : > { %4657 = vrcp.f32 %v3879_v40 }
 0x8aa   : > { %v3876_v19 = vpop.xlane.xlu1 %3875 }
 0x8ab   : > { %4659 = vrcp.f32 %v3876_v19 }
 0x8ae   : > { %v3873_v41 = vpop.xlane.xlu1 %3872 }
 0x8af   : > { %4661 = vrcp.f32 %v3873_v41 }
 0x8b2   : > { %v3870_v42 = vpop.xlane.xlu1 %3869 }
 0x8b3   : > { %4663 = vrcp.f32 %v3870_v42 }
 0x8b4   : > { %v4658_v44 = vpop.eup %4657 }
 0x8b5   : > { %v3895_v43 = vmul.f32 %v4658_v44, %v4642_v12 }
 0x8b6   : > { %v3867_v46 = vpop.xlane.xlu1 %3866 }
 0x8b7   : > { %4665 = vrcp.f32 %v3867_v46  ;;  %4593 = vmatprep.subr.msk.mxu0 %vm3807_vm10, %v3895_v43 }
 0x8b8   : > { %v4660_v23 = vpop.eup %4659  ;;  %4594 = vmatpush3.xpose.msk.msra.mxu0 %vm3807_vm10, %v3895_v43 }
 0x8b9   : > { %v3893_v50 = vmul.f32 %v4660_v23, %v4644_v14 }
 0x8ba   : > { %v3864_v51 = vpop.xlane.xlu1 %3863 }
 0x8bb   : > { %4667 = vrcp.f32 %v3864_v51  ;;  %4595 = vmatprep.subr.msk.mxu0 %vm3807_vm10, %v3893_v50 }
 0x8bc   : > { %v4662_v53 = vpop.eup %4661  ;;  %4596 = vmatpush3.xpose.msk.msra.mxu0 %vm3807_vm10, %v3893_v50 }
 0x8bd   : > { %v3891_v31 = vmul.f32 %v4662_v53, %v4646_v18 }
 0x8be   : > { %v3861_v55 = vpop.xlane.xlu1 %3860 }
 0x8bf   : > { %4669 = vrcp.f32 %v3861_v55  ;;  %4597 = vmatprep.subr.msk.mxu0 %vm3807_vm10, %v3891_v31 }
 0x8c0   : > { %v4664_v45 = vpop.eup %4663  ;;  %4598 = vmatpush3.xpose.msk.msra.mxu0 %vm3807_vm10, %v3891_v31 }
 0x8c1   : > { %v3889_v49 = vmul.f32 %v4664_v45, %v4648_v24 }
 0x8c2   : > { %v3858_v56 = vpop.xlane.xlu1 %3857 }
 0x8c3   : > { %4671 = vrcp.f32 %v3858_v56  ;;  %4599 = vmatprep.subr.msk.mxu0 %vm3807_vm10, %v3889_v49 }
 0x8c4   : > { %v4666_v57 = vpop.eup %4665  ;;  %4600 = vmatpush3.xpose.msk.msra.mxu0 %vm3807_vm10, %v3889_v49 }
 0x8c5   : > { %v3887_v58 = vmul.f32 %v4666_v57, %v4650_v27 }
 0x8c7   : > { %4601 = vmatprep.subr.msk.mxu0 %vm3807_vm10, %v3887_v58 }
 0x8c8   : > { %v4668_v28 = vpop.eup %4667  ;;  %4602 = vmatpush3.xpose.msk.msra.mxu0 %vm3807_vm10, %v3887_v58 }
 0x8c9   : > { %v3885_v59 = vmul.f32 %v4668_v28, %v4652_v48 }
 0x8cb   : > { %4603 = vmatprep.subr.msk.mxu0 %vm3807_vm10, %v3885_v59 }
 0x8cc   : > { %v4670_v60 = vpop.eup %4669  ;;  %4604 = vmatpush3.xpose.msk.msra.mxu0 %vm3807_vm10, %v3885_v59 }
 0x8cd   : > { %v3883_v35 = vmul.f32 %v4670_v60, %v4654_v33 }
 0x8cf   : > { %4605 = vmatprep.subr.msk.mxu0 %vm3807_vm10, %v3883_v35 }
 0x8d0   : > { %v4672_v61 = vpop.eup %4671  ;;  %4606 = vmatpush3.xpose.msk.msra.mxu0 %vm3807_vm10, %v3883_v35 }
 0x8d1   : > { %v3881_v62 = vmul.f32 %v4672_v61, %v4656_v34 }
 0x8d3   : > { %4607 = vmatprep.subr.msk.mxu0 %vm3807_vm10, %v3881_v62 }
 0x8d4   : > { %4608 = vmatpush3.xpose.msk.msra.mxu0 %vm3807_vm10, %v3881_v62 }
 0x8d7   : > { %4610 = vmatmul.mubr.msk.f32.vlgmr.msra.gmra.mxu0 %vm3807_vm10, %v4576_v38 }
 0x997   : > { %v4611_v47 = vpop.f32.mrf.mxu0 }
 0x998   : > { %v3998_v0 = vadd.f32 %v4611_v47, %v5452_v26 }
 0x999   : > { %v3992_v36 = vpop.f32.mrf.mxu0 }
 0x99a   : > { %4002 = vst.msk [vmem:[%s467_s26 + $0x8] sm:$0xff] %vm3807_vm10, %v3998_v0  ;;  %v3993_v1 = vadd.f32 %v3992_v36, %v5455_v29 }
 0x99c   : > { %4001 = vst.msk [vmem:[%s467_s26] sm:$0xff] %vm3807_vm10, %v3993_v1 }
 0x99d PF: > { %s24_s29 = sadd.s32 1, %s4679_s29  }
 0x99e   : > { %p21_p4 = scmp.ge.s32.totalorder %s24_s29, 4  }
 0x9a0   :  { %23 = sbr.rel (!%p21_p4) target bundleno = 9 (0x9), region = 130 }

</bundles_post_ra>
